<compile_context>
chip_gen: v7x
topology: tpu7x:2x2x1
jax: 0.10.0
libtpu: 0.0.40
codegen_flags: <defaults>
</compile_context>

<pallas_src>
import jax
import jax.numpy as jnp
from jax import lax
from jax.experimental import pallas as pl
from jax.experimental.pallas import tpu as pltpu


def _round_up(x, m):
    return (x + m - 1) // m * m


def _gru_bidir_fc_kernel(lens_smem_ref,        # (B,)   int32 SMEM (sorted desc)
                         lens_ref,             # (B,1)  int32 VMEM
                         emb_flat_ref,         # (T*B,H) compute dtype
                         wih_ref, bih_ref,     # (H,6H), (1,6H)
                         whh_f_ref, bhh_f_ref, # (H,3H), (1,3H)
                         whh_b_ref, bhh_b_ref,
                         wfc_f_ref, wfc_b_ref, # (H,O)
                         bfc_ref,              # (1,O)
                         out_ref,              # (B,O) f32
                         gx_scratch,           # (T,B,6H) f32
                         hf_scratch, hb_scratch):  # (B,H) f32
    B, H = hf_scratch.shape
    T = emb_flat_ref.shape[0] // B

    # ---- Stage 1: input projection for all timesteps & both directions as a
    # single big MXU matmul (this half of the per-step matmul work is not
    # recurrent).  b_ih is folded in here.
    gx_all = jnp.dot(emb_flat_ref[...], wih_ref[...],
                     preferred_element_type=jnp.float32) + bih_ref[...]
    gx_scratch[...] = gx_all.reshape(T, B, 6 * H)

    # ---- Stage 2: fused fwd/bwd recurrence, trip count = max(seq_lengths).
    max_len = lens_smem_ref[0]           # lengths sorted in decreasing order
    lens = lens_ref[...]                 # (B, 1)

    hf_scratch[...] = jnp.zeros_like(hf_scratch)
    hb_scratch[...] = jnp.zeros_like(hb_scratch)

    # Hoist the (1,3H)->(B,3H) bias broadcasts out of the serial loop.
    bhh_f = jnp.broadcast_to(bhh_f_ref[...], (B, 3 * H))
    bhh_b = jnp.broadcast_to(bhh_b_ref[...], (B, 3 * H))

    def gru_cell(gx, h, whh, bhh):
        # PyTorch GRU cell, gate order [r, z, n]; only the hidden projection
        # stays inside the recurrence.  MXU operands bf16, everything else f32.
        gh = jnp.dot(h.astype(whh.dtype), whh,
                     preferred_element_type=jnp.float32) + bhh
        r = jax.nn.sigmoid(gx[:, 0 * H:1 * H] + gh[:, 0 * H:1 * H])
        z = jax.nn.sigmoid(gx[:, 1 * H:2 * H] + gh[:, 1 * H:2 * H])
        n = jnp.tanh(gx[:, 2 * H:3 * H] + r * gh[:, 2 * H:3 * H])
        return (1.0 - z) * n + z * h

    def body(i, carry):
        # Forward direction at t = i; freezing h once t >= len reproduces
        # pack_padded_sequence semantics.
        tf = i
        gx_tf = gx_scratch[tf]                               # (B, 6H)
        hf = hf_scratch[...]
        hf_new = gru_cell(gx_tf[:, :3 * H], hf, whh_f_ref[...], bhh_f)
        hf_scratch[...] = jnp.where(tf < lens, hf_new, hf)

        # Backward direction at t = max_len - 1 - i (each sequence's reverse
        # pass effectively starts at its own last valid timestep).
        tb = max_len - 1 - i
        gx_tb = gx_scratch[tb]
        hb = hb_scratch[...]
        hb_new = gru_cell(gx_tb[:, 3 * H:], hb, whh_b_ref[...], bhh_b)
        hb_scratch[...] = jnp.where(tb < lens, hb_new, hb)
        return carry

    lax.fori_loop(0, max_len, body, 0)

    # ---- Stage 3: FC on concat([hidden[-1] (bwd), hidden[-2] (fwd)]) done as
    # two matmuls summed (avoids the lane-axis concat relayout); output lane
    # dim is padded to 128 so the store is unmasked / lane-dense.
    wfc_f = wfc_f_ref[...]
    wfc_b = wfc_b_ref[...]
    out_ref[...] = (
        jnp.dot(hb_scratch[...].astype(wfc_b.dtype), wfc_b,
                preferred_element_type=jnp.float32)
        + jnp.dot(hf_scratch[...].astype(wfc_f.dtype), wfc_f,
                  preferred_element_type=jnp.float32)
        + bfc_ref[...])


def rnn_classifier_forward(tokens, seq_lengths, params,
                           *, compute_dtype=jnp.bfloat16):
    """tokens: (batch, seq) int32; seq_lengths: (batch,) int32, sorted desc."""
    B, T = tokens.shape
    H = params["emb"].shape[1]
    O = params["w_fc"].shape[0]

    B_pad = _round_up(B, 8)
    H_pad = _round_up(H, 128)
    O_pad = _round_up(O, 128)
    f32 = jnp.float32

    # --- glue (embedding gather + layout) in plain JAX, time-major.
    emb = jnp.take(params["emb"].astype(compute_dtype), tokens.T, axis=0)  # (T,B,H)
    emb = jnp.pad(emb, ((0, 0), (0, B_pad - B), (0, H_pad - H)))
    emb_flat = emb.reshape(T * B_pad, H_pad)

    def pad2(w, r, c):
        return jnp.pad(w, ((0, r - w.shape[0]), (0, c - w.shape[1])))

    def pad_gate_w(w):   # torch (3H,H) -> transposed, per-gate padded (H_pad, 3H_pad)
        blocks = [pad2(w[k * H:(k + 1) * H].T, H_pad, H_pad) for k in range(3)]
        return jnp.concatenate(blocks, axis=1)

    def pad_gate_b(b):   # torch (3H,) -> (1, 3H_pad), per-gate padded
        blocks = [jnp.pad(b[k * H:(k + 1) * H], (0, H_pad - H)) for k in range(3)]
        return jnp.concatenate(blocks).reshape(1, 3 * H_pad)

    wih_both = jnp.concatenate(
        [pad_gate_w(params["w_ih_f"]), pad_gate_w(params["w_ih_b"])], axis=1)
    bih_both = jnp.concatenate(
        [pad_gate_b(params["b_ih_f"]), pad_gate_b(params["b_ih_b"])], axis=1)

    whh_f = pad_gate_w(params["w_hh_f"])
    whh_b = pad_gate_w(params["w_hh_b"])
    bhh_f = pad_gate_b(params["b_hh_f"])
    bhh_b = pad_gate_b(params["b_hh_b"])

    # fc_input = [h_bwd, h_fwd] -> out = hb @ Wfc[:, :H].T + hf @ Wfc[:, H:].T + b
    wfc = params["w_fc"]
    wfc_b = pad2(wfc[:, :H].T, H_pad, O_pad)
    wfc_f = pad2(wfc[:, H:].T, H_pad, O_pad)
    bfc = jnp.pad(params["b_fc"], (0, O_pad - O)).reshape(1, O_pad)

    lens = jnp.pad(seq_lengths.astype(jnp.int32), (0, B_pad - B))
    args = (
        lens,                          # SMEM: scalar loop bound (max length)
        lens.reshape(B_pad, 1),        # VMEM: per-row masking
        emb_flat,
        wih_both.astype(compute_dtype), bih_both.astype(f32),
        whh_f.astype(compute_dtype), bhh_f.astype(f32),
        whh_b.astype(compute_dtype), bhh_b.astype(f32),
        wfc_f.astype(compute_dtype), wfc_b.astype(compute_dtype),
        bfc.astype(f32),
    )

    # Explicit VMEM budget (inputs + output + scratch, x2 headroom).
    arg_bytes = sum(int(a.size) * a.dtype.itemsize for a in args)
    scratch_bytes = (T * B_pad * 6 * H_pad + 2 * B_pad * H_pad) * 4
    out_bytes = B_pad * O_pad * 4
    vmem_limit = int(min(2 * (arg_bytes + scratch_bytes + out_bytes) + (4 << 20),
                         64 << 20))

    smem_spec = pl.BlockSpec(memory_space=pltpu.MemorySpace.SMEM)
    vmem_spec = pl.BlockSpec(memory_space=pltpu.MemorySpace.VMEM)

    out_pad = pl.pallas_call(
        _gru_bidir_fc_kernel,
        out_shape=jax.ShapeDtypeStruct((B_pad, O_pad), f32),
        in_specs=[smem_spec] + [vmem_spec] * (len(args) - 1),
        out_specs=vmem_spec,
        scratch_shapes=[
            pltpu.VMEM((T, B_pad, 6 * H_pad), f32),   # precomputed input proj
            pltpu.VMEM((B_pad, H_pad), f32),          # h forward
            pltpu.VMEM((B_pad, H_pad), f32),          # h backward
        ],
        compiler_params=pltpu.CompilerParams(vmem_limit_bytes=vmem_limit),
    )(*args)
    # TODO(synk): for production T/B/H on v7x (64 MiB VMEM), stream emb / gx
    # time-chunks from HBM via make_async_copy double-buffering and/or split
    # the two directions across the 2 TensorCores with a parallel grid axis.
    return out_pad[:B, :O]


def _reference_forward(tokens, seq_lengths, params):
    """Pure-JAX f32 reference mirroring the torch semantics."""
    B, T = tokens.shape
    H = params["emb"].shape[1]
    emb = jnp.take(params["emb"], tokens.T, axis=0)            # (T, B, H)
    lens = seq_lengths.astype(jnp.int32).reshape(B, 1)

    def cell(x, h, wih, whh, bih, bhh):
        gx = x @ wih.T + bih
        gh = h @ whh.T + bhh
        r = jax.nn.sigmoid(gx[:, :H] + gh[:, :H])
        z = jax.nn.sigmoid(gx[:, H:2 * H] + gh[:, H:2 * H])
        n = jnp.tanh(gx[:, 2 * H:] + r * gh[:, 2 * H:])
        return (1.0 - z) * n + z * h

    h_f = jnp.zeros((B, H), jnp.float32)
    for t in range(T):
        h_new = cell(emb[t], h_f, params["w_ih_f"], params["w_hh_f"],
                     params["b_ih_f"], params["b_hh_f"])
        h_f = jnp.where(t < lens, h_new, h_f)

    h_b = jnp.zeros((B, H), jnp.float32)
    for t in range(T - 1, -1, -1):
        h_new = cell(emb[t], h_b, params["w_ih_b"], params["w_hh_b"],
                     params["b_ih_b"], params["b_hh_b"])
        h_b = jnp.where(t < lens, h_new, h_b)

    fc_in = jnp.concatenate([h_b, h_f], axis=1)                # [hidden[-1], hidden[-2]]
    return fc_in @ params["w_fc"].T + params["b_fc"]


def make_params(key, vocab_size, hidden_size, output_size):
    ks = jax.random.split(key, 12)
    s = 0.1
    H = hidden_size
    return {
        "emb":    jax.random.normal(ks[0], (vocab_size, H), jnp.float32) * s,
        "w_ih_f": jax.random.normal(ks[1], (3 * H, H), jnp.float32) * s,
        "w_hh_f": jax.random.normal(ks[2], (3 * H, H), jnp.float32) * s,
        "b_ih_f": jax.random.normal(ks[3], (3 * H,), jnp.float32) * s,
        "b_hh_f": jax.random.normal(ks[4], (3 * H,), jnp.float32) * s,
        "w_ih_b": jax.random.normal(ks[5], (3 * H, H), jnp.float32) * s,
        "w_hh_b": jax.random.normal(ks[6], (3 * H, H), jnp.float32) * s,
        "b_ih_b": jax.random.normal(ks[7], (3 * H,), jnp.float32) * s,
        "b_hh_b": jax.random.normal(ks[8], (3 * H,), jnp.float32) * s,
        "w_fc":   jax.random.normal(ks[9], (output_size, 2 * H), jnp.float32) * s,
        "b_fc":   jax.random.normal(ks[10], (output_size,), jnp.float32) * s,
    }


if __name__ == "__main__":
    VOCAB, HIDDEN, OUT = 16, 32, 4
    BATCH, SEQ = 2, 8

    key = jax.random.PRNGKey(0)
    pkey, tkey = jax.random.split(key)
    params = make_params(pkey, VOCAB, HIDDEN, OUT)

    tokens = jax.random.randint(tkey, (BATCH, SEQ), 0, VOCAB, dtype=jnp.int32)
    # pack_padded_sequence expects lengths sorted in decreasing order.
    seq_lengths = jnp.array([8, 5], dtype=jnp.int32)

    out = rnn_classifier_forward(tokens, seq_lengths, params)
    out = jax.block_until_ready(out)

    ref = _reference_forward(tokens, seq_lengths, params)
    assert out.shape == (BATCH, OUT)
    # bf16 MXU operands (f32 accumulation) -> relaxed tolerance vs f32 reference.
    assert jnp.allclose(out, ref, rtol=3e-2, atol=3e-2), (out, ref)

    print("KERNEL_OK")
</pallas_src>

<mosaic_0001>
module attributes {stable_mosaic.version = 11 : i64} {
  func.func @_gru_bidir_fc_kernel(%arg0: memref<8xi32, #tpu.memory_space<smem>>, %arg1: memref<8x1xi32, #tpu.memory_space<vmem>>, %arg2: memref<64x128xbf16, #tpu.memory_space<vmem>>, %arg3: memref<128x768xbf16, #tpu.memory_space<vmem>>, %arg4: memref<1x768xf32, #tpu.memory_space<vmem>>, %arg5: memref<128x384xbf16, #tpu.memory_space<vmem>>, %arg6: memref<1x384xf32, #tpu.memory_space<vmem>>, %arg7: memref<128x384xbf16, #tpu.memory_space<vmem>>, %arg8: memref<1x384xf32, #tpu.memory_space<vmem>>, %arg9: memref<128x128xbf16, #tpu.memory_space<vmem>>, %arg10: memref<128x128xbf16, #tpu.memory_space<vmem>>, %arg11: memref<1x128xf32, #tpu.memory_space<vmem>>, %arg12: memref<8x128xf32, #tpu.memory_space<vmem>>, %arg13: memref<8x8x768xf32, #tpu.memory_space<vmem>>, %arg14: memref<8x128xf32, #tpu.memory_space<vmem>>, %arg15: memref<8x128xf32, #tpu.memory_space<vmem>>) attributes {dimension_semantics = [], scalar_prefetch = 0 : i64, scratch_operands = 3 : i64, tpu.core_type = #tpu.core_type<tc>} {
    %c0 = arith.constant 0 : index
    %c0_0 = arith.constant 0 : index
    %0 = vector.load %arg2[%c0, %c0_0] : memref<64x128xbf16, #tpu.memory_space<vmem>>, vector<64x128xbf16>
    %c0_1 = arith.constant 0 : index
    %c0_2 = arith.constant 0 : index
    %1 = vector.load %arg3[%c0_1, %c0_2] : memref<128x768xbf16, #tpu.memory_space<vmem>>, vector<128x768xbf16>
    %cst = arith.constant dense<0.000000e+00> : vector<64x768xf32>
    %2 = tpu.matmul %0, %1, %cst {dimension_numbers = #tpu.dot_dimension_numbers<[1], [0], [0], [1], [0, 0, 1, 1], [], []>} : vector<64x128xbf16>, vector<128x768xbf16>, vector<64x768xf32> -> vector<64x768xf32>
    %c0_3 = arith.constant 0 : index
    %c0_4 = arith.constant 0 : index
    %3 = vector.load %arg4[%c0_3, %c0_4] : memref<1x768xf32, #tpu.memory_space<vmem>>, vector<1x768xf32>
    %4 = vector.broadcast %3 : vector<1x768xf32> to vector<64x768xf32>
    %5 = arith.addf %2, %4 : vector<64x768xf32>
    %6 = vector.shape_cast %5 : vector<64x768xf32> to vector<8x8x768xf32>
    %c0_5 = arith.constant 0 : index
    %c0_6 = arith.constant 0 : index
    %c0_7 = arith.constant 0 : index
    %7 = vector.load %arg13[%c0_5, %c0_6, %c0_7] : memref<8x8x768xf32, #tpu.memory_space<vmem>>, vector<8x8x768xf32>
    tpu.vector_store %arg13[%c0_5, %c0_6, %c0_7], %6 {strides = array<i32>} : memref<8x8x768xf32, #tpu.memory_space<vmem>>, vector<8x8x768xf32>,
    %c0_8 = arith.constant 0 : index
    %8 = memref.load %arg0[%c0_8] : memref<8xi32, #tpu.memory_space<smem>>
    %c0_9 = arith.constant 0 : index
    %c0_10 = arith.constant 0 : index
    %9 = vector.load %arg1[%c0_9, %c0_10] : memref<8x1xi32, #tpu.memory_space<vmem>>, vector<8x1xi32>
    %cst_11 = arith.constant 0.000000e+00 : f32
    %10 = vector.broadcast %cst_11 : f32 to vector<8x128xf32>
    %c0_12 = arith.constant 0 : index
    %c0_13 = arith.constant 0 : index
    %11 = vector.load %arg14[%c0_12, %c0_13] : memref<8x128xf32, #tpu.memory_space<vmem>>, vector<8x128xf32>
    tpu.vector_store %arg14[%c0_12, %c0_13], %10 {strides = array<i32>} : memref<8x128xf32, #tpu.memory_space<vmem>>, vector<8x128xf32>,
    %cst_14 = arith.constant 0.000000e+00 : f32
    %12 = vector.broadcast %cst_14 : f32 to vector<8x128xf32>
    %c0_15 = arith.constant 0 : index
    %c0_16 = arith.constant 0 : index
    %13 = vector.load %arg15[%c0_15, %c0_16] : memref<8x128xf32, #tpu.memory_space<vmem>>, vector<8x128xf32>
    tpu.vector_store %arg15[%c0_15, %c0_16], %12 {strides = array<i32>} : memref<8x128xf32, #tpu.memory_space<vmem>>, vector<8x128xf32>,
    %c0_17 = arith.constant 0 : index
    %c0_18 = arith.constant 0 : index
    %14 = vector.load %arg6[%c0_17, %c0_18] : memref<1x384xf32, #tpu.memory_space<vmem>>, vector<1x384xf32>
    %15 = vector.shape_cast %14 : vector<1x384xf32> to vector<1x384xf32>
    %16 = vector.broadcast %15 : vector<1x384xf32> to vector<8x384xf32>
    %c0_19 = arith.constant 0 : index
    %c0_20 = arith.constant 0 : index
    %17 = vector.load %arg8[%c0_19, %c0_20] : memref<1x384xf32, #tpu.memory_space<vmem>>, vector<1x384xf32>
    %18 = vector.shape_cast %17 : vector<1x384xf32> to vector<1x384xf32>
    %19 = vector.broadcast %18 : vector<1x384xf32> to vector<8x384xf32>
    %c0_i32 = arith.constant 0 : i32
    %c0_i32_21 = arith.constant 0 : i32
    %20 = arith.subi %8, %c0_i32_21 : i32
    %21 = arith.addi %c0_i32_21, %20 : i32
    %c1_i32 = arith.constant 1 : i32
    scf.for %arg16 = %c0_i32_21 to %21 step %c1_i32  : i32 {
      %35 = arith.index_cast %arg16 : i32 to index
      %c0_36 = arith.constant 0 : index
      %c0_37 = arith.constant 0 : index
      %36 = vector.load %arg13[%35, %c0_36, %c0_37] : memref<8x8x768xf32, #tpu.memory_space<vmem>>, vector<1x8x768xf32>
      %37 = vector.shape_cast %36 : vector<1x8x768xf32> to vector<8x768xf32>
      %c0_38 = arith.constant 0 : index
      %c0_39 = arith.constant 0 : index
      %38 = vector.load %arg14[%c0_38, %c0_39] : memref<8x128xf32, #tpu.memory_space<vmem>>, vector<8x128xf32>
      %39 = vector.extract_strided_slice %37 {offsets = [0, 0], sizes = [8, 384], strides = [1, 1]} : vector<8x768xf32> to vector<8x384xf32>
      %c0_40 = arith.constant 0 : index
      %c0_41 = arith.constant 0 : index
      %40 = vector.load %arg5[%c0_40, %c0_41] : memref<128x384xbf16, #tpu.memory_space<vmem>>, vector<128x384xbf16>
      %41 = arith.truncf %38 : vector<8x128xf32> to vector<8x128xbf16>
      %cst_42 = arith.constant dense<0.000000e+00> : vector<8x384xf32>
      %42 = tpu.matmul %41, %40, %cst_42 {dimension_numbers = #tpu.dot_dimension_numbers<[1], [0], [0], [1], [0, 0, 1, 1], [], []>} : vector<8x128xbf16>, vector<128x384xbf16>, vector<8x384xf32> -> vector<8x384xf32>
      %43 = arith.addf %42, %16 : vector<8x384xf32>
      %44 = vector.extract_strided_slice %39 {offsets = [0, 0], sizes = [8, 128], strides = [1, 1]} : vector<8x384xf32> to vector<8x128xf32>
      %45 = vector.extract_strided_slice %43 {offsets = [0, 0], sizes = [8, 128], strides = [1, 1]} : vector<8x384xf32> to vector<8x128xf32>
      %46 = arith.addf %44, %45 : vector<8x128xf32>
      %47 = arith.negf %46 : vector<8x128xf32>
      %48 = math.exp %47 : vector<8x128xf32>
      %cst_43 = arith.constant 1.000000e+00 : f32
      %49 = vector.broadcast %cst_43 : f32 to vector<8x128xf32>
      %50 = arith.addf %49, %48 : vector<8x128xf32>
      %51 = arith.divf %49, %50 : vector<8x128xf32>
      %52 = vector.extract_strided_slice %39 {offsets = [0, 128], sizes = [8, 128], strides = [1, 1]} : vector<8x384xf32> to vector<8x128xf32>
      %53 = vector.extract_strided_slice %43 {offsets = [0, 128], sizes = [8, 128], strides = [1, 1]} : vector<8x384xf32> to vector<8x128xf32>
      %54 = arith.addf %52, %53 : vector<8x128xf32>
      %55 = arith.negf %54 : vector<8x128xf32>
      %56 = math.exp %55 : vector<8x128xf32>
      %cst_44 = arith.constant 1.000000e+00 : f32
      %57 = vector.broadcast %cst_44 : f32 to vector<8x128xf32>
      %58 = arith.addf %57, %56 : vector<8x128xf32>
      %59 = arith.divf %57, %58 : vector<8x128xf32>
      %60 = vector.extract_strided_slice %39 {offsets = [0, 256], sizes = [8, 128], strides = [1, 1]} : vector<8x384xf32> to vector<8x128xf32>
      %61 = vector.extract_strided_slice %43 {offsets = [0, 256], sizes = [8, 128], strides = [1, 1]} : vector<8x384xf32> to vector<8x128xf32>
      %62 = arith.mulf %51, %61 : vector<8x128xf32>
      %63 = arith.addf %60, %62 : vector<8x128xf32>
      %64 = math.tanh %63 : vector<8x128xf32>
      %cst_45 = arith.constant 1.000000e+00 : f32
      %65 = vector.broadcast %cst_45 : f32 to vector<8x128xf32>
      %66 = arith.subf %65, %59 : vector<8x128xf32>
      %67 = arith.mulf %66, %64 : vector<8x128xf32>
      %68 = arith.mulf %59, %38 : vector<8x128xf32>
      %69 = arith.addf %67, %68 : vector<8x128xf32>
      %70 = vector.broadcast %arg16 : i32 to vector<8x1xi32>
      %71 = arith.cmpi slt, %70, %9 : vector<8x1xi32>
      %72 = vector.shape_cast %71 : vector<8x1xi1> to vector<8x1xi1>
      %73 = vector.broadcast %72 : vector<8x1xi1> to vector<8x128xi1>
      %74 = arith.select %73, %69, %38 : vector<8x128xi1>, vector<8x128xf32>
      %c0_46 = arith.constant 0 : index
      %c0_47 = arith.constant 0 : index
      %75 = vector.load %arg14[%c0_46, %c0_47] : memref<8x128xf32, #tpu.memory_space<vmem>>, vector<8x128xf32>
      tpu.vector_store %arg14[%c0_46, %c0_47], %74 {strides = array<i32>} : memref<8x128xf32, #tpu.memory_space<vmem>>, vector<8x128xf32>,
      %c1_i32_48 = arith.constant 1 : i32
      %76 = arith.subi %8, %c1_i32_48 : i32
      %77 = arith.subi %76, %arg16 : i32
      %78 = arith.index_cast %77 : i32 to index
      %c0_49 = arith.constant 0 : index
      %c0_50 = arith.constant 0 : index
      %79 = vector.load %arg13[%78, %c0_49, %c0_50] : memref<8x8x768xf32, #tpu.memory_space<vmem>>, vector<1x8x768xf32>
      %80 = vector.shape_cast %79 : vector<1x8x768xf32> to vector<8x768xf32>
      %c0_51 = arith.constant 0 : index
      %c0_52 = arith.constant 0 : index
      %81 = vector.load %arg15[%c0_51, %c0_52] : memref<8x128xf32, #tpu.memory_space<vmem>>, vector<8x128xf32>
      %82 = vector.extract_strided_slice %80 {offsets = [0, 384], sizes = [8, 384], strides = [1, 1]} : vector<8x768xf32> to vector<8x384xf32>
      %c0_53 = arith.constant 0 : index
      %c0_54 = arith.constant 0 : index
      %83 = vector.load %arg7[%c0_53, %c0_54] : memref<128x384xbf16, #tpu.memory_space<vmem>>, vector<128x384xbf16>
      %84 = arith.truncf %81 : vector<8x128xf32> to vector<8x128xbf16>
      %cst_55 = arith.constant dense<0.000000e+00> : vector<8x384xf32>
      %85 = tpu.matmul %84, %83, %cst_55 {dimension_numbers = #tpu.dot_dimension_numbers<[1], [0], [0], [1], [0, 0, 1, 1], [], []>} : vector<8x128xbf16>, vector<128x384xbf16>, vector<8x384xf32> -> vector<8x384xf32>
      %86 = arith.addf %85, %19 : vector<8x384xf32>
      %87 = vector.extract_strided_slice %82 {offsets = [0, 0], sizes = [8, 128], strides = [1, 1]} : vector<8x384xf32> to vector<8x128xf32>
      %88 = vector.extract_strided_slice %86 {offsets = [0, 0], sizes = [8, 128], strides = [1, 1]} : vector<8x384xf32> to vector<8x128xf32>
      %89 = arith.addf %87, %88 : vector<8x128xf32>
      %90 = arith.negf %89 : vector<8x128xf32>
      %91 = math.exp %90 : vector<8x128xf32>
      %cst_56 = arith.constant 1.000000e+00 : f32
      %92 = vector.broadcast %cst_56 : f32 to vector<8x128xf32>
      %93 = arith.addf %92, %91 : vector<8x128xf32>
      %94 = arith.divf %92, %93 : vector<8x128xf32>
      %95 = vector.extract_strided_slice %82 {offsets = [0, 128], sizes = [8, 128], strides = [1, 1]} : vector<8x384xf32> to vector<8x128xf32>
      %96 = vector.extract_strided_slice %86 {offsets = [0, 128], sizes = [8, 128], strides = [1, 1]} : vector<8x384xf32> to vector<8x128xf32>
      %97 = arith.addf %95, %96 : vector<8x128xf32>
      %98 = arith.negf %97 : vector<8x128xf32>
      %99 = math.exp %98 : vector<8x128xf32>
      %cst_57 = arith.constant 1.000000e+00 : f32
      %100 = vector.broadcast %cst_57 : f32 to vector<8x128xf32>
      %101 = arith.addf %100, %99 : vector<8x128xf32>
      %102 = arith.divf %100, %101 : vector<8x128xf32>
      %103 = vector.extract_strided_slice %82 {offsets = [0, 256], sizes = [8, 128], strides = [1, 1]} : vector<8x384xf32> to vector<8x128xf32>
      %104 = vector.extract_strided_slice %86 {offsets = [0, 256], sizes = [8, 128], strides = [1, 1]} : vector<8x384xf32> to vector<8x128xf32>
      %105 = arith.mulf %94, %104 : vector<8x128xf32>
      %106 = arith.addf %103, %105 : vector<8x128xf32>
      %107 = math.tanh %106 : vector<8x128xf32>
      %cst_58 = arith.constant 1.000000e+00 : f32
      %108 = vector.broadcast %cst_58 : f32 to vector<8x128xf32>
      %109 = arith.subf %108, %102 : vector<8x128xf32>
      %110 = arith.mulf %109, %107 : vector<8x128xf32>
      %111 = arith.mulf %102, %81 : vector<8x128xf32>
      %112 = arith.addf %110, %111 : vector<8x128xf32>
      %113 = vector.broadcast %77 : i32 to vector<8x1xi32>
      %114 = arith.cmpi slt, %113, %9 : vector<8x1xi32>
      %115 = vector.shape_cast %114 : vector<8x1xi1> to vector<8x1xi1>
      %116 = vector.broadcast %115 : vector<8x1xi1> to vector<8x128xi1>
      %117 = arith.select %116, %112, %81 : vector<8x128xi1>, vector<8x128xf32>
      %c0_59 = arith.constant 0 : index
      %c0_60 = arith.constant 0 : index
      %118 = vector.load %arg15[%c0_59, %c0_60] : memref<8x128xf32, #tpu.memory_space<vmem>>, vector<8x128xf32>
      tpu.vector_store %arg15[%c0_59, %c0_60], %117 {strides = array<i32>} : memref<8x128xf32, #tpu.memory_space<vmem>>, vector<8x128xf32>,
    }
    %c0_22 = arith.constant 0 : index
    %c0_23 = arith.constant 0 : index
    %22 = vector.load %arg9[%c0_22, %c0_23] : memref<128x128xbf16, #tpu.memory_space<vmem>>, vector<128x128xbf16>
    %c0_24 = arith.constant 0 : index
    %c0_25 = arith.constant 0 : index
    %23 = vector.load %arg10[%c0_24, %c0_25] : memref<128x128xbf16, #tpu.memory_space<vmem>>, vector<128x128xbf16>
    %c0_26 = arith.constant 0 : index
    %c0_27 = arith.constant 0 : index
    %24 = vector.load %arg15[%c0_26, %c0_27] : memref<8x128xf32, #tpu.memory_space<vmem>>, vector<8x128xf32>
    %25 = arith.truncf %24 : vector<8x128xf32> to vector<8x128xbf16>
    %cst_28 = arith.constant dense<0.000000e+00> : vector<8x128xf32>
    %26 = tpu.matmul %25, %23, %cst_28 {dimension_numbers = #tpu.dot_dimension_numbers<[1], [0], [0], [1], [0, 0, 1, 1], [], []>} : vector<8x128xbf16>, vector<128x128xbf16>, vector<8x128xf32> -> vector<8x128xf32>
    %c0_29 = arith.constant 0 : index
    %c0_30 = arith.constant 0 : index
    %27 = vector.load %arg14[%c0_29, %c0_30] : memref<8x128xf32, #tpu.memory_space<vmem>>, vector<8x128xf32>
    %28 = arith.truncf %27 : vector<8x128xf32> to vector<8x128xbf16>
    %cst_31 = arith.constant dense<0.000000e+00> : vector<8x128xf32>
    %29 = tpu.matmul %28, %22, %cst_31 {dimension_numbers = #tpu.dot_dimension_numbers<[1], [0], [0], [1], [0, 0, 1, 1], [], []>} : vector<8x128xbf16>, vector<128x128xbf16>, vector<8x128xf32> -> vector<8x128xf32>
    %30 = arith.addf %26, %29 : vector<8x128xf32>
    %c0_32 = arith.constant 0 : index
    %c0_33 = arith.constant 0 : index
    %31 = vector.load %arg11[%c0_32, %c0_33] : memref<1x128xf32, #tpu.memory_space<vmem>>, vector<1x128xf32>
    %32 = vector.broadcast %31 : vector<1x128xf32> to vector<8x128xf32>
    %33 = arith.addf %30, %32 : vector<8x128xf32>
    %c0_34 = arith.constant 0 : index
    %c0_35 = arith.constant 0 : index
    %34 = vector.load %arg12[%c0_34, %c0_35] : memref<8x128xf32, #tpu.memory_space<vmem>>, vector<8x128xf32>
    tpu.vector_store %arg12[%c0_34, %c0_35], %33 {strides = array<i32>} : memref<8x128xf32, #tpu.memory_space<vmem>>, vector<8x128xf32>,
    return
  }
}

</mosaic_0001>

<bundles_post_ra>
// kernel: tpu_custom_call.1
= control target key start
LH: loop header
LB: loop body
LE: loop exit
PB: predicated region body
PF: predicated region fallthrough
CT: control target
= control target key end

     0   :  { %17 = vsyncpa [#allocation8], 0  ;;  %s2676_s0 = inlined_call_operand.hbm [shape: s32[8], index: 0, kind: input, shape index: {}]   ;;  %s2677_s1 = inlined_call_operand.vmem [shape: s32[8,1], index: 1, kind: input, shape index: {}]   ;;  %s2678_s2 = inlined_call_operand.hbm [shape: bf16[64,128], index: 2, kind: input, shape index: {}]   ;;  %s2679_s3 = inlined_call_operand.hbm [shape: bf16[128,768], index: 3, kind: input, shape index: {}]   ;;  %s2680_s4 = inlined_call_operand.vmem [shape: f32[1,768], index: 4, kind: input, shape index: {}]   ;;  %s2681_s5 = inlined_call_operand.hbm [shape: bf16[128,384], index: 5, kind: input, shape index: {}]   ;;  %s2682_s6 = inlined_call_operand.vmem [shape: f32[1,384], index: 6, kind: input, shape index: {}]   ;;  %s2683_s7 = inlined_call_operand.hbm [shape: bf16[128,384], index: 7, kind: input, shape index: {}]   ;;  %s2684_s8 = inlined_call_operand.vmem [shape: f32[1,384], index: 8, kind: input, shape index: {}]   ;;  %s2685_s9 = inlined_call_operand.hbm [shape: bf16[128,128], index: 9, kind: input, shape index: {}]   ;;  %s2686_s10 = inlined_call_operand.hbm [shape: bf16[128,128], index: 10, kind: input, shape index: {}]   ;;  %s2687_s11 = inlined_call_operand.vmem [shape: f32[1,128], index: 11, kind: input, shape index: {}]   ;;  %s2688_s12 = inlined_call_operand.hbm [shape: f32[8,128], index: 12, kind: output, shape index: {}]  }
   0x1   :  { %18 = vsyncpa [#allocation6], 0 }
   0x2   :  { %19 = vsyncpa [#allocation11], 0 }
   0x3   :  { %20 = vsyncpa [#allocation14], 0 }
   0x4   :  { %21 = vsyncpa [#allocation17], 0 }
   0x5   :  { %22 = vsyncpa [#allocation7], 0  ;;  %s2256_s21 = smov [#allocation10]   ;;  %s2072_s25 = scalar_lea.hbm %s2679_s3, 6144 }
   0x6   :  { %s50_s22 = sshll.u32 %s2256_s21, 4  ;;  %p2073_p0 = scmp.ne.s32.totalorder %s2679_s3, %s2072_s25  ;;  %s51_s22 = int_to_ptr.vmem [resolvable:$true] %s50_s22 }
   0x7   :  { %p2076_p1 = scmp.lt.u32.totalorder %s2072_s25, %s2679_s3 }
   0x9   :  { %p2078_p2 = pnand %p2076_p1, %p2073_p0 }
   0xb   :  { %2081 = shalt.err (!%p2078_p2)
}
   0xc   :  { %s2082_s30 = scalar_lea.vmem %s51_s22, 6144  ;;  %p2087_p4 = scmp.lt.s32.totalorder %s51_s22, %s51_s22 }
   0xd   :  { %p2083_p3 = scmp.ne.s32.totalorder %s51_s22, %s2082_s30  ;;  %p2088_p5 = scmp.lt.s32.totalorder %s2082_s30, %s2082_s30 }
   0xf   :  { %p2089_p6 = por %p2088_p5, %p2087_p4 }
  0x11   :  { %p2090_p7 = pnand %p2089_p6, %p2083_p3 }
  0x13   :  { %2093 = shalt.err (!%p2090_p7)
}
  0x14   :  { %s2257_s13 = smov 384   ;;  %s2258_s14 = smov 24  }
  0x15   :  { %56 = dma.hbm_to_vmem [thread:$0]  %s2679_s3, 6144, %s51_s22, [#allocation11], %s2257_s13, %s2257_s13, %s2258_s14  }
  0x16   :  { %s2259_s17 = smov [#allocation13]   ;;  %s2094_s21 = scalar_lea.hbm %s2683_s7, 3072 }
  0x17   :  { %s78_s18 = sshll.u32 %s2259_s17, 4  ;;  %p2095_p8 = scmp.ne.s32.totalorder %s2683_s7, %s2094_s21  ;;  %s79_s18 = int_to_ptr.vmem [resolvable:$true] %s78_s18 }
  0x18   :  { %p2098_p9 = scmp.lt.u32.totalorder %s2094_s21, %s2683_s7 }
  0x1a   :  { %p2100_p10 = pnand %p2098_p9, %p2095_p8 }
  0x1c   :  { %2103 = shalt.err (!%p2100_p10)
}
  0x1d   :  { %s2104_s27 = scalar_lea.vmem %s79_s18, 3072  ;;  %p2109_p12 = scmp.lt.s32.totalorder %s79_s18, %s79_s18 }
  0x1e   :  { %p2105_p11 = scmp.ne.s32.totalorder %s79_s18, %s2104_s27  ;;  %p2110_p13 = scmp.lt.s32.totalorder %s2104_s27, %s2104_s27 }
  0x20   :  { %p2111_p0 = por %p2110_p13, %p2109_p12 }
  0x22   :  { %p2112_p1 = pnand %p2111_p0, %p2105_p11 }
  0x24   :  { %2115 = shalt.err (!%p2112_p1)
}
  0x25   :  { %s2260_s3 = smov 192   ;;  %s2261_s22 = smov 12  }
  0x26   :  { %84 = dma.hbm_to_vmem [thread:$0]  %s2683_s7, 3072, %s79_s18, [#allocation14], %s2260_s3, %s2260_s3, %s2261_s22  }
  0x27   :  { %s2116_s14 = scalar_lea.hbm %s2676_s0, 16 }
  0x28   :  { %p2117_p2 = scmp.ne.s32.totalorder %s2676_s0, %s2116_s14  ;;  %p2120_p3 = scmp.lt.u32.totalorder %s2116_s14, %s2676_s0 }
  0x2a   :  { %p2122_p4 = pnand %p2120_p3, %p2117_p2 }
  0x2c   :  { %2125 = shalt.err (!%p2122_p4)
}
  0x2d   :  { %s2262_s20 = smov [#allocation5]   ;;  %s2263_s7 = smov [#allocation9]  }
  0x2e   :  { %30 = dma.hbm_to_smem %s2676_s0, 16, %s2262_s20, [#allocation8]  }
  0x2f   :  { %s38_s18 = sshll.u32 %s2263_s7, 4  ;;  %s2126_s26 = scalar_lea.hbm %s2678_s2, 512  ;;  %s39_s18 = int_to_ptr.vmem [resolvable:$true] %s38_s18 }
  0x30   :  { %p2127_p5 = scmp.ne.s32.totalorder %s2678_s2, %s2126_s26  ;;  %p2130_p6 = scmp.lt.u32.totalorder %s2126_s26, %s2678_s2 }
  0x32   :  { %p2132_p7 = pnand %p2130_p6, %p2127_p5 }
  0x34   :  { %2135 = shalt.err (!%p2132_p7)
}
  0x35   :  { %s2136_s13 = scalar_lea.vmem %s39_s18, 512  ;;  %p2141_p9 = scmp.lt.s32.totalorder %s39_s18, %s39_s18 }
  0x36   :  { %p2137_p8 = scmp.ne.s32.totalorder %s39_s18, %s2136_s13  ;;  %p2142_p10 = scmp.lt.s32.totalorder %s2136_s13, %s2136_s13 }
  0x38   :  { %p2143_p11 = por %p2142_p10, %p2141_p9 }
  0x3a   :  { %p2144_p12 = pnand %p2143_p11, %p2137_p8 }
  0x3c   :  { %2147 = shalt.err (!%p2144_p12)
}
  0x3d   :  { %s2264_s0 = smov 64   ;;  %s2265_s14 = smov 4  }
  0x3e   :  { %44 = dma.hbm_to_vmem [thread:$0]  %s2678_s2, 512, %s39_s18, [#allocation6], %s2264_s0, %s2264_s0, %s2265_s14  }
  0x3f   :  { %s2266_s17 = smov [#allocation12]   ;;  %s2267_s20 = smov [#allocation15]  }
  0x40   :  { %s64_s19 = sshll.u32 %s2266_s17, 4  ;;  %s92_s21 = sshll.u32 %s2267_s20, 4  ;;  %s65_s19 = int_to_ptr.vmem [resolvable:$true] %s64_s19  ;;  %s2395_s21 = int_to_ptr.vmem [resolvable:$true] %s92_s21 }
  0x41   :  { %s2148_s24 = scalar_lea.hbm %s2681_s5, 3072 }
  0x42   :  { %p2149_p13 = scmp.ne.s32.totalorder %s2681_s5, %s2148_s24  ;;  %p2152_p0 = scmp.lt.u32.totalorder %s2148_s24, %s2681_s5 }
  0x44   :  { %p2154_p1 = pnand %p2152_p0, %p2149_p13 }
  0x46   :  { %2157 = shalt.err (!%p2154_p1)
}
  0x47   :  { %s2158_s2 = scalar_lea.vmem %s65_s19, 3072  ;;  %p2163_p3 = scmp.lt.s32.totalorder %s65_s19, %s65_s19 }
  0x48   :  { %p2159_p2 = scmp.ne.s32.totalorder %s65_s19, %s2158_s2  ;;  %p2164_p4 = scmp.lt.s32.totalorder %s2158_s2, %s2158_s2 }
  0x4a   :  { %p2165_p5 = por %p2164_p4, %p2163_p3 }
  0x4c   :  { %p2166_p6 = pnand %p2165_p5, %p2159_p2 }
  0x4e   :  { %2169 = shalt.err (!%p2166_p6)
}
  0x4f   :  { %70 = dma.hbm_to_vmem [thread:$0]  %s2681_s5, 3072, %s65_s19, [#allocation11], %s2260_s3, %s2260_s3, %s2261_s22  }
  0x50   :  { %s2170_s15 = scalar_lea.hbm %s2685_s9, 1024 }
  0x51   :  { %p2171_p7 = scmp.ne.s32.totalorder %s2685_s9, %s2170_s15  ;;  %p2174_p8 = scmp.lt.u32.totalorder %s2170_s15, %s2685_s9 }
  0x53   :  { %p2176_p9 = pnand %p2174_p8, %p2171_p7 }
  0x55   :  { %2179 = shalt.err (!%p2176_p9)
}
  0x56   :  { %s2180_s7 = scalar_lea.vmem %s2395_s21, 1024  ;;  %p2185_p11 = scmp.lt.s32.totalorder %s2395_s21, %s2395_s21 }
  0x57   :  { %p2181_p10 = scmp.ne.s32.totalorder %s2395_s21, %s2180_s7  ;;  %p2186_p12 = scmp.lt.s32.totalorder %s2180_s7, %s2180_s7 }
  0x59   :  { %p2187_p13 = por %p2186_p12, %p2185_p11 }
  0x5b   :  { %p2188_p0 = pnand %p2187_p13, %p2181_p10 }
  0x5d   :  { %2191 = shalt.err (!%p2188_p0)
}
  0x5e   :  { %98 = dma.hbm_to_vmem [thread:$0]  %s2685_s9, 1024, %s2395_s21, [#allocation14], %s2264_s0, %s2264_s0, %s2265_s14  }
  0x5f   :  { %s2268_s22 = smov [#allocation16]   ;;  %s2192_s26 = scalar_lea.hbm %s2686_s10, 1024 }
  0x60   :  { %s104_s19 = sshll.u32 %s2268_s22, 4  ;;  %p2193_p1 = scmp.ne.s32.totalorder %s2686_s10, %s2192_s26  ;;  %s105_s19 = int_to_ptr.vmem [resolvable:$true] %s104_s19 }
  0x61   :  { %p2196_p2 = scmp.lt.u32.totalorder %s2192_s26, %s2686_s10 }
  0x63   :  { %p2198_p3 = pnand %p2196_p2, %p2193_p1 }
  0x65   :  { %2201 = shalt.err (!%p2198_p3)
}
  0x66   :  { %s2202_s29 = scalar_lea.vmem %s105_s19, 1024  ;;  %p2207_p5 = scmp.lt.s32.totalorder %s105_s19, %s105_s19 }
  0x67   :  { %p2203_p4 = scmp.ne.s32.totalorder %s105_s19, %s2202_s29  ;;  %p2208_p6 = scmp.lt.s32.totalorder %s2202_s29, %s2202_s29 }
  0x69   :  { %p2209_p7 = por %p2208_p6, %p2207_p5 }
  0x6b   :  { %p2210_p8 = pnand %p2209_p7, %p2203_p4 }
  0x6d   :  { %2213 = shalt.err (!%p2210_p8)
}
  0x6e   :  { %110 = dma.hbm_to_vmem [thread:$0]  %s2686_s10, 1024, %s105_s19, [#allocation17], %s2264_s0, %s2264_s0, %s2265_s14  }
  0x6f   :  { %2240 = dma.done.wait [#allocation8], 16  }
  0x70   :  { %2241 = vsyncadd [#allocation8], 4294967280 }
  0x71   :  { %2242 = dma.done.wait [#allocation6], 512  }
  0x72   :  { %2243 = vsyncadd [#allocation6], 4294966784 }
  0x73   :  { %2244 = dma.done.wait [#allocation11], 9216  }
  0x74   :  { %2245 = vsyncadd [#allocation11], 4294958080 }
  0x75   :  { %2246 = dma.done.wait [#allocation14], 4096  }
  0x76   :  { %2247 = vsyncadd [#allocation14], 4294963200 }
  0x77   :  { %2248 = dma.done.wait [#allocation17], 1024  }
  0x78   :  { %2249 = vsyncadd [#allocation17], 4294966272 }
  0x79   :  { %134 = sfence }
  0x7a   :  { %v1895_v0 = vld [vmem:[#allocation10 + $0x4] ss:$24 sps:$4 sm:$0xff]   ;;  %v2269_v2 = vmov 0   ;;  %v1899_v3 = vld [vmem:[#allocation10] ss:$24 sps:$4 sm:$0xff]   ;;  %v1950_v39 = vld [vmem:[#allocation9 + $0x8] sm:$0xff]   ;;  %v194_v53 = vlaneseq }
  0x7b   :  { %v1897_v1 = vld [vmem:[#allocation10 + $0xc] ss:$24 sps:$4 sm:$0xff]   ;;  %520 = vmatprep.mubr.bf16.mxu0 %v2269_v2  ;;  %593 = vmatprep.mubr.bf16.mxu1 %v2269_v2  ;;  %v1900_v4 = vld [vmem:[#allocation10 + $0x8] ss:$24 sps:$4 sm:$0xff]   ;;  %v1903_v6 = vld [vmem:[#allocation10 + $0x3c] ss:$24 sps:$4 sm:$0xff]  }
  0x7c   :  { %488 = vmatprep.subr.bf16.mxu0 %v1895_v0  ;;  %561 = vmatprep.subr.bf16.mxu1 %v1897_v1  ;;  %v1901_v5 = vld [vmem:[#allocation10 + $0x34] ss:$24 sps:$4 sm:$0xff]   ;;  %v1905_v7 = vld [vmem:[#allocation10 + $0x30] ss:$24 sps:$4 sm:$0xff]   ;;  %v1907_v9 = vld [vmem:[#allocation10 + $0x64] ss:$24 sps:$4 sm:$0xff]  }
  0x7d   :  { %489 = vmatpush1.bf16.msra.mxu0 %v1899_v3  ;;  %562 = vmatpush1.bf16.msra.mxu1 %v1900_v4  ;;  %v1906_v8 = vld [vmem:[#allocation10 + $0x38] ss:$24 sps:$4 sm:$0xff]   ;;  %v1909_v10 = vld [vmem:[#allocation10 + $0x6c] ss:$24 sps:$4 sm:$0xff]   ;;  %v1912_v12 = vld [vmem:[#allocation10 + $0x68] ss:$24 sps:$4 sm:$0xff]  }
  0x7e   :  { %490 = vmatprep.subr.bf16.mxu0 %v1901_v5  ;;  %563 = vmatprep.subr.bf16.mxu1 %v1903_v6  ;;  %v1911_v11 = vld [vmem:[#allocation10 + $0x60] ss:$24 sps:$4 sm:$0xff]   ;;  %v1913_v13 = vld [vmem:[#allocation10 + $0x94] ss:$24 sps:$4 sm:$0xff]   ;;  %v1917_v15 = vld [vmem:[#allocation10 + $0x90] ss:$24 sps:$4 sm:$0xff]  }
  0x7f   :  { %v1915_v14 = vld [vmem:[#allocation10 + $0x9c] ss:$24 sps:$4 sm:$0xff]   ;;  %v1918_v16 = vld [vmem:[#allocation10 + $0x98] ss:$24 sps:$4 sm:$0xff]   ;;  %v1921_v18 = vld [vmem:[#allocation10 + $0xcc] ss:$24 sps:$4 sm:$0xff]  }
  0x80   :  { %v1919_v17 = vld [vmem:[#allocation10 + $0xc4] ss:$24 sps:$4 sm:$0xff]   ;;  %v1923_v19 = vld [vmem:[#allocation10 + $0xc0] ss:$24 sps:$4 sm:$0xff]   ;;  %v1925_v21 = vld [vmem:[#allocation10 + $0xf4] ss:$24 sps:$4 sm:$0xff]  }
  0x81   :  { %491 = vmatpush1.bf16.msra.mxu0 %v1905_v7  ;;  %564 = vmatpush1.bf16.msra.mxu1 %v1906_v8  ;;  %v1924_v20 = vld [vmem:[#allocation10 + $0xc8] ss:$24 sps:$4 sm:$0xff]   ;;  %v1927_v22 = vld [vmem:[#allocation10 + $0xfc] ss:$24 sps:$4 sm:$0xff]   ;;  %v1930_v24 = vld [vmem:[#allocation10 + $0xf8] ss:$24 sps:$4 sm:$0xff]  }
  0x82   :  { %492 = vmatprep.subr.bf16.mxu0 %v1907_v9  ;;  %565 = vmatprep.subr.bf16.mxu1 %v1909_v10  ;;  %v1929_v23 = vld [vmem:[#allocation10 + $0xf0] ss:$24 sps:$4 sm:$0xff]   ;;  %v1931_v25 = vld [vmem:[#allocation10 + $0x124] ss:$24 sps:$4 sm:$0xff]   ;;  %v1935_v27 = vld [vmem:[#allocation10 + $0x120] ss:$24 sps:$4 sm:$0xff]  }
  0x83   :  { %v1933_v26 = vld [vmem:[#allocation10 + $0x12c] ss:$24 sps:$4 sm:$0xff]   ;;  %v1936_v28 = vld [vmem:[#allocation10 + $0x128] ss:$24 sps:$4 sm:$0xff]   ;;  %v1939_v30 = vld [vmem:[#allocation10 + $0x15c] ss:$24 sps:$4 sm:$0xff]  }
  0x84   :  { %v1937_v29 = vld [vmem:[#allocation10 + $0x154] ss:$24 sps:$4 sm:$0xff]   ;;  %v1941_v31 = vld [vmem:[#allocation10 + $0x150] ss:$24 sps:$4 sm:$0xff]   ;;  %v2449_v34 = vld [vmem:[#allocation9] sm:$0xff]   ;;  %v2464_v54 = vshrl.u32 %v194_v53, 7 }
  0x85   :  { %493 = vmatpush1.bf16.msra.mxu0 %v1911_v11  ;;  %566 = vmatpush1.bf16.msra.mxu1 %v1912_v12  ;;  %v1942_v32 = vld [vmem:[#allocation10 + $0x158] ss:$24 sps:$4 sm:$0xff]   ;;  %v1946_v33 = vld [vmem:[#allocation10 + $0x14] ss:$24 sps:$4 sm:$0xff]   ;;  %v1949_v36 = vld [vmem:[#allocation10 + $0x44] ss:$24 sps:$4 sm:$0xff]  }
  0x86   :  { %494 = vmatprep.subr.bf16.mxu0 %v1913_v13  ;;  %567 = vmatprep.subr.bf16.mxu1 %v1915_v14  ;;  %v1944_v35 = vld [vmem:[#allocation10 + $0x10] ss:$24 sps:$4 sm:$0xff]   ;;  %v1947_v37 = vld [vmem:[#allocation10 + $0x40] ss:$24 sps:$4 sm:$0xff]   ;;  %v1953_v38 = vld [vmem:[#allocation10 + $0x74] ss:$24 sps:$4 sm:$0xff]  }
  0x87   :  { %v1951_v40 = vld [vmem:[#allocation10 + $0x70] ss:$24 sps:$4 sm:$0xff]   ;;  %v1956_v41 = vld [vmem:[#allocation10 + $0xa4] ss:$24 sps:$4 sm:$0xff]   ;;  %v1954_v42 = vld [vmem:[#allocation10 + $0xa0] ss:$24 sps:$4 sm:$0xff]  }
  0x88   :  { %v1960_v43 = vld [vmem:[#allocation10 + $0xd4] ss:$24 sps:$4 sm:$0xff]   ;;  %v1958_v45 = vld [vmem:[#allocation10 + $0xd0] ss:$24 sps:$4 sm:$0xff]   ;;  %v1963_v46 = vld [vmem:[#allocation10 + $0x104] ss:$24 sps:$4 sm:$0xff]  }
  0x89   :  { %495 = vmatpush1.bf16.msra.mxu0 %v1917_v15  ;;  %568 = vmatpush1.bf16.msra.mxu1 %v1918_v16  ;;  %v1957_v44 = vld [vmem:[#allocation9 + $0x10] sm:$0xff]   ;;  %v1961_v47 = vld [vmem:[#allocation10 + $0x100] ss:$24 sps:$4 sm:$0xff]   ;;  %v1970_v51 = vld [vmem:[#allocation10 + $0x164] ss:$24 sps:$4 sm:$0xff]   ;;  %v2467_v55 = vsub.s32 0, %v2464_v54 }
  0x8a   :  { %496 = vmatprep.subr.bf16.mxu0 %v1919_v17  ;;  %569 = vmatprep.subr.bf16.mxu1 %v1921_v18  ;;  %v1967_v48 = vld [vmem:[#allocation10 + $0x134] ss:$24 sps:$4 sm:$0xff]   ;;  %v1964_v49 = vld [vmem:[#allocation9 + $0x18] sm:$0xff]   ;;  %v1965_v50 = vld [vmem:[#allocation10 + $0x130] ss:$24 sps:$4 sm:$0xff]   ;;  %v2470_v56 = vsub.s32 2, %v2464_v54 }
  0x8b   :  { %v1968_v52 = vld [vmem:[#allocation10 + $0x160] ss:$24 sps:$4 sm:$0xff]   ;;  %v2475_v57 = vld [vmem:[%s2682_s6] sm:$0x7]  ;;  %v2483_v59 = vsub.s32 1, %v2464_v54  ;;  %s2497_s6 = sld [smem:[#allocation5]] }
  0x8c   :  { %v2480_v58 = vld [vmem:[%s2684_s8] sm:$0x7]  ;;  %v764_v60 = vrot.slane %v2475_v57, %v2467_v55  ;;  %v772_v62 = vrot.slane %v2475_v57, %v2470_v56  ;;  %v2270_v3 = vmov 0.0   ;;  %v208_v5 = vsub.s32 3, %v2464_v54 }
  0x8d   :  { %497 = vmatpush1.bf16.msra.mxu0 %v1923_v19  ;;  %570 = vmatpush1.bf16.msra.mxu1 %v1924_v20  ;;  %v781_v61 = vrot.slane %v2480_v58, %v2467_v55  ;;  %v789_v63 = vrot.slane %v2480_v58, %v2470_v56  ;;  %v768_v0 = vrot.slane %v2475_v57, %v2483_v59  ;;  %v2509_v4 = vld [vmem:[%s2680_s4] sm:$0x3f] }
  0x8e   :  { %498 = vmatprep.subr.bf16.mxu0 %v1925_v21  ;;  %571 = vmatprep.subr.bf16.mxu1 %v1927_v22  ;;  %v785_v1 = vrot.slane %v2480_v58, %v2483_v59  ;;  %757 = vst [vmem:[#allocation3] sm:$0xff] %v2270_v3  ;;  %758 = vst [vmem:[#allocation4] sm:$0xff] %v2270_v3  ;;  %v2514_v6 = vrot.slane %v2509_v4, %v2467_v55 }
  0x8f   :  { %v2518_v7 = vrot.slane %v2509_v4, %v2470_v56  ;;  %v2522_v8 = vrot.slane %v2509_v4, %v2483_v59  ;;  %v2525_v9 = vrot.slane %v2509_v4, %v208_v5 }
  0x91   :  { %499 = vmatpush1.bf16.msra.mxu0 %v1929_v23  ;;  %572 = vmatpush1.bf16.msra.mxu1 %v1930_v24  ;;  %p1660_p9 = scmp.le.s32.totalorder %s2497_s6, 0 }
  0x92   :  { %500 = vmatprep.subr.bf16.mxu0 %v1931_v25  ;;  %573 = vmatprep.subr.bf16.mxu1 %v1933_v26 }
  0x95   :  { %501 = vmatpush1.bf16.msra.mxu0 %v1935_v27  ;;  %574 = vmatpush1.bf16.msra.mxu1 %v1936_v28 }
  0x96   :  { %502 = vmatprep.subr.bf16.mxu0 %v1937_v29  ;;  %575 = vmatprep.subr.bf16.mxu1 %v1939_v30 }
  0x99   :  { %503 = vmatpush1.bf16.msra.mxu0 %v1941_v31  ;;  %576 = vmatpush1.bf16.msra.mxu1 %v1942_v32 }
  0x9a   :  { %634 = vmatprep.subr.bf16.mxu0 %v1946_v33  ;;  %1851 = vmatprep.subr.bf16.mxu1 %v1946_v33 }
  0x9c   :  { %521 = vmatmul.mubr.bf16.vlgmr.msra.gmra.mrb[0].mxu0 %v2449_v34  ;;  %594 = vmatmul.mubr.bf16.vlgmr.msra.gmra.mrb[0].mxu1 %v2449_v34 }
  0x9d   :  { %635 = vmatpush1.bf16.msra.mxu0 %v1944_v35  ;;  %1859 = vmatpush1.bf16.msra.mxu1 %v1944_v35 }
  0x9e   :  { %636 = vmatprep.subr.bf16.mxu0 %v1949_v36  ;;  %1852 = vmatprep.subr.bf16.mxu1 %v1949_v36 }
  0x9f   :  { %530 = vmatprep.mubr.bf16.mxu0 %v2269_v2  ;;  %603 = vmatprep.mubr.bf16.mxu1 %v2269_v2 }
  0xa1   :  { %637 = vmatpush1.bf16.msra.mxu0 %v1947_v37  ;;  %1860 = vmatpush1.bf16.msra.mxu1 %v1947_v37 }
  0xa2   :  { %638 = vmatprep.subr.bf16.mxu0 %v1953_v38  ;;  %1853 = vmatprep.subr.bf16.mxu1 %v1953_v38 }
  0xa4   :  { %531 = vmatmul.mubr.bf16.gmra.mrb[4].mxu0 %v1950_v39  ;;  %604 = vmatmul.mubr.bf16.gmra.mrb[4].mxu1 %v1950_v39 }
  0xa5   :  { %639 = vmatpush1.bf16.msra.mxu0 %v1951_v40  ;;  %1861 = vmatpush1.bf16.msra.mxu1 %v1951_v40 }
  0xa6   :  { %640 = vmatprep.subr.bf16.mxu0 %v1956_v41  ;;  %1854 = vmatprep.subr.bf16.mxu1 %v1956_v41 }
  0xa7   :  { %540 = vmatprep.mubr.bf16.mxu0 %v2269_v2  ;;  %613 = vmatprep.mubr.bf16.mxu1 %v2269_v2 }
  0xa9   :  { %641 = vmatpush1.bf16.msra.mxu0 %v1954_v42  ;;  %1862 = vmatpush1.bf16.msra.mxu1 %v1954_v42 }
  0xaa   :  { %642 = vmatprep.subr.bf16.mxu0 %v1960_v43  ;;  %1855 = vmatprep.subr.bf16.mxu1 %v1960_v43 }
  0xac   :  { %541 = vmatmul.mubr.bf16.gmra.mrb[8].mxu0 %v1957_v44  ;;  %614 = vmatmul.mubr.bf16.gmra.mrb[8].mxu1 %v1957_v44 }
  0xad   :  { %643 = vmatpush1.bf16.msra.mxu0 %v1958_v45  ;;  %1863 = vmatpush1.bf16.msra.mxu1 %v1958_v45 }
  0xae   :  { %644 = vmatprep.subr.bf16.mxu0 %v1963_v46  ;;  %1856 = vmatprep.subr.bf16.mxu1 %v1963_v46 }
  0xaf   :  { %550 = vmatprep.mubr.bf16.mxu0 %v2269_v2  ;;  %623 = vmatprep.mubr.bf16.mxu1 %v2269_v2 }
  0xb1   :  { %645 = vmatpush1.bf16.msra.mxu0 %v1961_v47  ;;  %1864 = vmatpush1.bf16.msra.mxu1 %v1961_v47 }
  0xb2   :  { %646 = vmatprep.subr.bf16.mxu0 %v1967_v48  ;;  %1857 = vmatprep.subr.bf16.mxu1 %v1967_v48 }
  0xb4   :  { %551 = vmatmul.mubr.bf16.gmra.mrb[12].mxu0 %v1964_v49  ;;  %624 = vmatmul.mubr.bf16.gmra.mrb[12].mxu1 %v1964_v49 }
  0xb5   :  { %647 = vmatpush1.bf16.msra.mxu0 %v1965_v50  ;;  %1865 = vmatpush1.bf16.msra.mxu1 %v1965_v50 }
  0xb6   :  { %648 = vmatprep.subr.bf16.mxu0 %v1970_v51  ;;  %1858 = vmatprep.subr.bf16.mxu1 %v1970_v51 }
  0xb7   :  { %666 = vmatprep.mubr.bf16.mxu0 %v2269_v2  ;;  %686 = vmatprep.mubr.bf16.mxu1 %v2269_v2 }
  0xb9   :  { %649 = vmatpush1.bf16.msra.mxu0 %v1968_v52  ;;  %1866 = vmatpush1.bf16.msra.mxu1 %v1968_v52 }
  0xbc   :  { %667 = vmatmul.mubr.bf16.vlgmr.msra.gmra.mrb[16].mxu0 %v2449_v34  ;;  %687 = vmatmul.mubr.bf16.vlgmr.msra.gmra.mrb[16].mxu1 %v1957_v44 }
  0xbd   :  { %676 = vmatprep.mubr.bf16.mxu0 %v2269_v2  ;;  %696 = vmatprep.mubr.bf16.mxu1 %v2269_v2  ;;  %v2502_v2 = vld [vmem:[%s2677_s1] sm:$0xff]  ;;  %s2564_s1 = smov (!%p1660_p9), 0  }
  0xc4   :  { %677 = vmatmul.mubr.bf16.gmra.mrb[20].mxu0 %v1950_v39  ;;  %697 = vmatmul.mubr.bf16.gmra.mrb[20].mxu1 %v1964_v49 }
 0x16f   :  { %v522_v10 = vpop.f32.mrb[0].mxu0  ;;  %v595_v11 = vpop.f32.mrb[0].mxu1 }
 0x170   :  { %v523_v12 = vadd.f32 %v522_v10, %v2514_v6  ;;  %v596_v13 = vadd.f32 %v595_v11, %v2518_v7  ;;  %v524_v14 = vpop.f32.mrb[1].mxu0  ;;  %v597_v15 = vpop.f32.mrb[1].mxu1 }
 0x171   :  { %v525_v16 = vadd.f32 %v524_v14, %v2522_v8  ;;  %v598_v17 = vadd.f32 %v597_v15, %v2525_v9  ;;  %v526_v18 = vpop.f32.mrb[2].mxu0  ;;  %v599_v19 = vpop.f32.mrb[2].mxu1 }
 0x172   :  { %707 = vst [vmem:[#allocation2] sm:$0xff] %v523_v12  ;;  %709 = vst [vmem:[#allocation2 + $0x10] sm:$0xff] %v596_v13  ;;  %v527_v20 = vadd.f32 %v526_v18, %v2514_v6  ;;  %v600_v21 = vadd.f32 %v599_v19, %v2518_v7  ;;  %v528_v22 = vpop.f32.mrb[3].mxu0  ;;  %v601_v23 = vpop.f32.mrb[3].mxu1  ;;  %v212_v19 = vsub.s32 4, %v2464_v54 }
 0x173   :  { %708 = vst [vmem:[#allocation2 + $0x8] sm:$0xff] %v525_v16  ;;  %710 = vst [vmem:[#allocation2 + $0x18] sm:$0xff] %v598_v17  ;;  %v529_v24 = vadd.f32 %v528_v22, %v2522_v8  ;;  %v602_v25 = vadd.f32 %v601_v23, %v2525_v9 }
 0x174   :  { %713 = vst [vmem:[#allocation2 + $0x30] sm:$0xff] %v527_v20  ;;  %715 = vst [vmem:[#allocation2 + $0x40] sm:$0xff] %v600_v21 }
 0x175   :  { %714 = vst [vmem:[#allocation2 + $0x38] sm:$0xff] %v529_v24  ;;  %716 = vst [vmem:[#allocation2 + $0x48] sm:$0xff] %v602_v25  ;;  %v216_v24 = vsub.s32 5, %v2464_v54 }
 0x177   :  { %v532_v26 = vpop.f32.mrb[4].mxu0  ;;  %v605_v27 = vpop.f32.mrb[4].mxu1  ;;  %v217_v54 = vrot.slane %v2509_v4, %v216_v24 }
 0x178   :  { %v533_v28 = vadd.f32 %v532_v26, %v2514_v6  ;;  %v606_v29 = vadd.f32 %v605_v27, %v2518_v7  ;;  %v534_v30 = vpop.f32.mrb[5].mxu0  ;;  %v607_v31 = vpop.f32.mrb[5].mxu1 }
 0x179   :  { %v535_v32 = vadd.f32 %v534_v30, %v2522_v8  ;;  %v608_v33 = vadd.f32 %v607_v31, %v2525_v9  ;;  %v536_v34 = vpop.f32.mrb[6].mxu0  ;;  %v609_v35 = vpop.f32.mrb[6].mxu1  ;;  %v213_v31 = vrot.slane %v2509_v4, %v212_v19 }
 0x17a   :  { %719 = vst [vmem:[#allocation2 + $0x60] sm:$0xff] %v533_v28  ;;  %721 = vst [vmem:[#allocation2 + $0x70] sm:$0xff] %v606_v29  ;;  %v537_v36 = vadd.f32 %v536_v34, %v2514_v6  ;;  %v610_v37 = vadd.f32 %v609_v35, %v2518_v7  ;;  %v538_v38 = vpop.f32.mrb[7].mxu0  ;;  %v611_v39 = vpop.f32.mrb[7].mxu1 }
 0x17b   :  { %720 = vst [vmem:[#allocation2 + $0x68] sm:$0xff] %v535_v32  ;;  %722 = vst [vmem:[#allocation2 + $0x78] sm:$0xff] %v608_v33  ;;  %v539_v40 = vadd.f32 %v538_v38, %v2522_v8  ;;  %v612_v41 = vadd.f32 %v611_v39, %v2525_v9 }
 0x17c   :  { %725 = vst [vmem:[#allocation2 + $0x90] sm:$0xff] %v537_v36  ;;  %727 = vst [vmem:[#allocation2 + $0xa0] sm:$0xff] %v610_v37 }
 0x17d   :  { %726 = vst [vmem:[#allocation2 + $0x98] sm:$0xff] %v539_v40  ;;  %728 = vst [vmem:[#allocation2 + $0xa8] sm:$0xff] %v612_v41 }
 0x17f   :  { %v542_v42 = vpop.f32.mrb[8].mxu0  ;;  %v615_v43 = vpop.f32.mrb[8].mxu1 }
 0x180   :  { %v543_v44 = vadd.f32 %v542_v42, %v2514_v6  ;;  %v616_v45 = vadd.f32 %v615_v43, %v2518_v7  ;;  %v544_v46 = vpop.f32.mrb[9].mxu0  ;;  %v617_v47 = vpop.f32.mrb[9].mxu1 }
 0x181   :  { %v545_v48 = vadd.f32 %v544_v46, %v2522_v8  ;;  %v618_v49 = vadd.f32 %v617_v47, %v2525_v9  ;;  %v546_v50 = vpop.f32.mrb[10].mxu0  ;;  %v619_v51 = vpop.f32.mrb[10].mxu1 }
 0x182   :  { %731 = vst [vmem:[#allocation2 + $0xc0] sm:$0xff] %v543_v44  ;;  %733 = vst [vmem:[#allocation2 + $0xd0] sm:$0xff] %v616_v45  ;;  %v547_v52 = vadd.f32 %v546_v50, %v2514_v6  ;;  %v620_v53 = vadd.f32 %v619_v51, %v2518_v7  ;;  %v548_v5 = vpop.f32.mrb[11].mxu0  ;;  %v621_v10 = vpop.f32.mrb[11].mxu1 }
 0x183   :  { %732 = vst [vmem:[#allocation2 + $0xc8] sm:$0xff] %v545_v48  ;;  %734 = vst [vmem:[#allocation2 + $0xd8] sm:$0xff] %v618_v49  ;;  %v549_v11 = vadd.f32 %v548_v5, %v2522_v8  ;;  %v622_v12 = vadd.f32 %v621_v10, %v2525_v9 }
 0x184   :  { %737 = vst [vmem:[#allocation2 + $0xf0] sm:$0xff] %v547_v52  ;;  %739 = vst [vmem:[#allocation2 + $0x100] sm:$0xff] %v620_v53 }
 0x185   :  { %738 = vst [vmem:[#allocation2 + $0xf8] sm:$0xff] %v549_v11  ;;  %740 = vst [vmem:[#allocation2 + $0x108] sm:$0xff] %v622_v12 }
 0x187   :  { %v552_v13 = vpop.f32.mrb[12].mxu0  ;;  %v625_v14 = vpop.f32.mrb[12].mxu1 }
 0x188   :  { %v553_v15 = vadd.f32 %v552_v13, %v2514_v6  ;;  %v626_v16 = vadd.f32 %v625_v14, %v2518_v7  ;;  %v554_v17 = vpop.f32.mrb[13].mxu0  ;;  %v627_v18 = vpop.f32.mrb[13].mxu1 }
 0x189   :  { %v555_v20 = vadd.f32 %v554_v17, %v2522_v8  ;;  %v628_v21 = vadd.f32 %v627_v18, %v2525_v9  ;;  %v556_v22 = vpop.f32.mrb[14].mxu0  ;;  %v629_v23 = vpop.f32.mrb[14].mxu1 }
 0x18a   :  { %743 = vst [vmem:[#allocation2 + $0x120] sm:$0xff] %v553_v15  ;;  %745 = vst [vmem:[#allocation2 + $0x130] sm:$0xff] %v626_v16  ;;  %v557_v25 = vadd.f32 %v556_v22, %v2514_v6  ;;  %v630_v26 = vadd.f32 %v629_v23, %v2518_v7  ;;  %v558_v27 = vpop.f32.mrb[15].mxu0  ;;  %v631_v28 = vpop.f32.mrb[15].mxu1 }
 0x18b   :  { %744 = vst [vmem:[#allocation2 + $0x128] sm:$0xff] %v555_v20  ;;  %746 = vst [vmem:[#allocation2 + $0x138] sm:$0xff] %v628_v21  ;;  %v559_v29 = vadd.f32 %v558_v27, %v2522_v8  ;;  %v632_v30 = vadd.f32 %v631_v28, %v2525_v9 }
 0x18c   :  { %749 = vst [vmem:[#allocation2 + $0x150] sm:$0xff] %v557_v25  ;;  %751 = vst [vmem:[#allocation2 + $0x160] sm:$0xff] %v630_v26 }
 0x18d   :  { %750 = vst [vmem:[#allocation2 + $0x158] sm:$0xff] %v559_v29  ;;  %752 = vst [vmem:[#allocation2 + $0x168] sm:$0xff] %v632_v30 }
 0x18f   :  { %v668_v32 = vpop.f32.mrb[16].mxu0  ;;  %v688_v6 = vpop.f32.mrb[16].mxu1 }
 0x190   :  { %v669_v33 = vadd.f32 %v668_v32, %v213_v31  ;;  %v689_v7 = vadd.f32 %v688_v6, %v213_v31  ;;  %v670_v34 = vpop.f32.mrb[17].mxu0  ;;  %v690_v35 = vpop.f32.mrb[17].mxu1 }
 0x191   :  { %v671_v36 = vadd.f32 %v670_v34, %v217_v54  ;;  %v691_v37 = vadd.f32 %v690_v35, %v217_v54  ;;  %v672_v38 = vpop.f32.mrb[18].mxu0  ;;  %v692_v8 = vpop.f32.mrb[18].mxu1 }
 0x192   :  { %711 = vst [vmem:[#allocation2 + $0x20] sm:$0xff] %v669_v33  ;;  %735 = vst [vmem:[#allocation2 + $0xe0] sm:$0xff] %v689_v7  ;;  %v673_v9 = vadd.f32 %v672_v38, %v213_v31  ;;  %v693_v39 = vadd.f32 %v692_v8, %v213_v31  ;;  %v674_v40 = vpop.f32.mrb[19].mxu0  ;;  %v694_v41 = vpop.f32.mrb[19].mxu1 }
 0x193   :  { %712 = vst [vmem:[#allocation2 + $0x28] sm:$0xff] %v671_v36  ;;  %736 = vst [vmem:[#allocation2 + $0xe8] sm:$0xff] %v691_v37  ;;  %v675_v42 = vadd.f32 %v674_v40, %v217_v54  ;;  %v695_v4 = vadd.f32 %v694_v41, %v217_v54 }
 0x194   :  { %717 = vst [vmem:[#allocation2 + $0x50] sm:$0xff] %v673_v9  ;;  %741 = vst [vmem:[#allocation2 + $0x110] sm:$0xff] %v693_v39 }
 0x195   :  { %718 = vst [vmem:[#allocation2 + $0x58] sm:$0xff] %v675_v42  ;;  %742 = vst [vmem:[#allocation2 + $0x118] sm:$0xff] %v695_v4 }
 0x197   :  { %v678_v43 = vpop.f32.mrb[20].mxu0  ;;  %v698_v44 = vpop.f32.mrb[20].mxu1  ;;  %1605 = sbr.rel (%p1660_p9) target bundleno = 743 (0x2e7), region = 99 }
 0x198   :  { %v679_v45 = vadd.f32 %v678_v43, %v213_v31  ;;  %v699_v46 = vadd.f32 %v698_v44, %v213_v31  ;;  %v680_v47 = vpop.f32.mrb[21].mxu0  ;;  %v700_v48 = vpop.f32.mrb[21].mxu1 }
 0x199   :  { %v681_v49 = vadd.f32 %v680_v47, %v217_v54  ;;  %v701_v50 = vadd.f32 %v700_v48, %v217_v54  ;;  %v682_v51 = vpop.f32.mrb[22].mxu0  ;;  %v702_v52 = vpop.f32.mrb[22].mxu1 }
 0x19a   :  { %723 = vst [vmem:[#allocation2 + $0x80] sm:$0xff] %v679_v45  ;;  %747 = vst [vmem:[#allocation2 + $0x140] sm:$0xff] %v699_v46  ;;  %v683_v53 = vadd.f32 %v682_v51, %v213_v31  ;;  %v703_v5 = vadd.f32 %v702_v52, %v213_v31  ;;  %v684_v10 = vpop.f32.mrb[23].mxu0  ;;  %v704_v11 = vpop.f32.mrb[23].mxu1 }
 0x19b   :  { %724 = vst [vmem:[#allocation2 + $0x88] sm:$0xff] %v681_v49  ;;  %748 = vst [vmem:[#allocation2 + $0x148] sm:$0xff] %v701_v50  ;;  %v685_v12 = vadd.f32 %v684_v10, %v217_v54  ;;  %v705_v13 = vadd.f32 %v704_v11, %v217_v54 }
 0x19c   :  { %729 = vst [vmem:[#allocation2 + $0xb0] sm:$0xff] %v683_v53  ;;  %753 = vst [vmem:[#allocation2 + $0x170] sm:$0xff] %v703_v5 }
 0x19d   :  { %730 = vst [vmem:[#allocation2 + $0xb8] sm:$0xff] %v685_v12  ;;  %754 = vst [vmem:[#allocation2 + $0x178] sm:$0xff] %v705_v13 }
 0x19e LB: > { %v1972_v14 = vld [vmem:[#allocation12 + $0x4] ss:$12 sps:$4 sm:$0xff]   ;;  %v1974_v15 = vld [vmem:[#allocation12] ss:$12 sps:$4 sm:$0xff]   ;;  %v2271_v16 = vmov 0.0   ;;  %v2272_v17 = vmov 0   ;;  %v1069_v19 = vstv %s2254_s1  ;;  %s2254_s1 = sphi %s2564_s1, %s796_s1  }
 0x19f   : > { %1771 = vmatprep.subr.bf16.mxu1 %v2271_v16  ;;  %999 = vmatprep.mubr.bf16.mxu0 %v2272_v17  ;;  %s1688_s4 = sadd.s32 4294967295, %s2497_s6  ;;  %v1975_v18 = vld [vmem:[#allocation12 + $0x1c] ss:$12 sps:$4 sm:$0xff]   ;;  %vm2273_vm0 = vmmov 0   ;;  %v1977_v20 = vld [vmem:[#allocation12 + $0x18] ss:$12 sps:$4 sm:$0xff]   ;;  %vm1070_vm1 = vcmp.lt.s32.totalorder %v1069_v19, %v2502_v2 }
 0x1a0   : > { %967 = vmatprep.subr.bf16.mxu0 %v1972_v14  ;;  %1787 = vmatprep.mubr.msk.bf16.mxu1 %vm2273_vm0, %v2271_v16  ;;  %s2576_s17 = ssub.s32 %s1688_s4, %s2254_s1  ;;  %v1978_v22 = vld [vmem:[#allocation12 + $0x34] ss:$12 sps:$4 sm:$0xff]   ;;  %v1071_v23 = vsel %vm1070_vm1, 1, %v2272_v17  ;;  %v1980_v25 = vld [vmem:[#allocation12 + $0x30] ss:$12 sps:$4 sm:$0xff]   ;;  %s1733_s20 = smul.u32 48, %s2254_s1 }
 0x1a1   : > { %968 = vmatpush1.bf16.msra.mxu0 %v1974_v15  ;;  %1971 = vset.pattern.permute.xlu0 %v2272_v17  ;;  %v1350_v21 = vstv %s2576_s17  ;;  %v1981_v26 = vld [vmem:[#allocation12 + $0x4c] ss:$12 sps:$4 sm:$0xff]   ;;  %v1993_v27 = vld [vmem:[#allocation12 + $0x8] ss:$12 sps:$4 sm:$0xff]   ;;  %v1984_v29 = vld [vmem:[#allocation12 + $0x64] ss:$12 sps:$4 sm:$0xff]  }
 0x1a2   : > { %969 = vmatprep.subr.bf16.mxu0 %v1975_v18  ;;  %vm1351_vm2 = vcmp.lt.s32.totalorder %v1350_v21, %v2502_v2  ;;  %1073 = vperm.xlu0 %1971, %v1071_v23   ;;  %v1983_v28 = vld [vmem:[#allocation12 + $0x48] ss:$12 sps:$4 sm:$0xff]   ;;  %v1997_v30 = vld [vmem:[#allocation12 + $0x20] ss:$12 sps:$4 sm:$0xff]   ;;  %v2001_v32 = vld [vmem:[#allocation12 + $0x38] ss:$12 sps:$4 sm:$0xff]  }
 0x1a3   : > { %v1352_v24 = vsel %vm1351_vm2, 1, %v2272_v17  ;;  %1772 = vmatpush3.bf16.msra.mxu1 %v1993_v27  ;;  %v1986_v31 = vld [vmem:[#allocation12 + $0x60] ss:$12 sps:$4 sm:$0xff]   ;;  %v1987_v54 = vld [vmem:[#allocation12 + $0x7c] ss:$12 sps:$4 sm:$0xff]   ;;  %v2588_v38 = vld [vmem:[#allocation3] sm:$0xff] }
 0x1a4   : > { %1773 = vmatprep.subr.bf16.mxu1 %v2271_v16  ;;  %v1989_v6 = vld [vmem:[#allocation12 + $0x78] ss:$12 sps:$4 sm:$0xff]   ;;  %v1990_v33 = vld [vmem:[#allocation12 + $0x94] ss:$12 sps:$4 sm:$0xff]   ;;  %v2005_v7 = vld [vmem:[#allocation12 + $0x50] ss:$12 sps:$4 sm:$0xff]   ;;  %v838_v39 = vpack.c.bf16 %v2588_v38, %v2588_v38 }
 0x1a5   : > { %970 = vmatpush1.bf16.msra.mxu0 %v1977_v20  ;;  %v1992_v34 = vld [vmem:[#allocation12 + $0x90] ss:$12 sps:$4 sm:$0xff]   ;;  %v1994_v35 = vld [vmem:[#allocation12 + $0xac] ss:$12 sps:$4 sm:$0xff]   ;;  %v2009_v36 = vld [vmem:[#allocation12 + $0x68] ss:$12 sps:$4 sm:$0xff]  }
 0x1a6   : > { %971 = vmatprep.subr.bf16.mxu0 %v1978_v22  ;;  %1354 = vperm.xlu0 %1971, %v1352_v24   ;;  %v1996_v37 = vld [vmem:[#allocation12 + $0xa8] ss:$12 sps:$4 sm:$0xff]   ;;  %v2000_v8 = vld [vmem:[#allocation13 + $0x4] ss:$12 sps:$4 sm:$0xff]   ;;  %v2013_v9 = vld [vmem:[#allocation12 + $0x80] ss:$12 sps:$4 sm:$0xff]  }
 0x1a7   : > { %1774 = vmatpush3.bf16.msra.mxu1 %v1997_v30  ;;  %v1998_v40 = vld [vmem:[#allocation13] ss:$12 sps:$4 sm:$0xff]   ;;  %v2004_v41 = vld [vmem:[#allocation13 + $0x1c] ss:$12 sps:$4 sm:$0xff]   ;;  %v2017_v42 = vld [vmem:[#allocation12 + $0x98] ss:$12 sps:$4 sm:$0xff]  }
 0x1a8   : > { %1775 = vmatprep.subr.bf16.mxu1 %v2271_v16  ;;  %v2002_v4 = vld [vmem:[#allocation13 + $0x18] ss:$12 sps:$4 sm:$0xff]   ;;  %v2008_v43 = vld [vmem:[#allocation13 + $0x34] ss:$12 sps:$4 sm:$0xff]   ;;  %v2021_v44 = vld [vmem:[#allocation12 + $0xb0] ss:$12 sps:$4 sm:$0xff]  }
 0x1a9   : > { %972 = vmatpush1.bf16.msra.mxu0 %v1980_v25  ;;  %v2006_v45 = vld [vmem:[#allocation13 + $0x30] ss:$12 sps:$4 sm:$0xff]   ;;  %v2012_v46 = vld [vmem:[#allocation13 + $0x4c] ss:$12 sps:$4 sm:$0xff]   ;;  %v2025_v47 = vld [vmem:[#allocation13 + $0x8] ss:$12 sps:$4 sm:$0xff]  }
 0x1aa   : > { %973 = vmatprep.subr.bf16.mxu0 %v1981_v26  ;;  %v2010_v48 = vld [vmem:[#allocation13 + $0x48] ss:$12 sps:$4 sm:$0xff]   ;;  %v2016_v49 = vld [vmem:[#allocation13 + $0x64] ss:$12 sps:$4 sm:$0xff]   ;;  %v2029_v50 = vld [vmem:[#allocation13 + $0x20] ss:$12 sps:$4 sm:$0xff]  }
 0x1ab   : > { %1776 = vmatpush3.bf16.msra.mxu1 %v2001_v32  ;;  %v2014_v51 = vld [vmem:[#allocation13 + $0x60] ss:$12 sps:$4 sm:$0xff]   ;;  %v2020_v52 = vld [vmem:[#allocation13 + $0x7c] ss:$12 sps:$4 sm:$0xff]   ;;  %v2030_v53 = vld [vmem:[#allocation13 + $0x38] ss:$12 sps:$4 sm:$0xff]  }
 0x1ac   : > { %1777 = vmatprep.subr.bf16.mxu1 %v2271_v16  ;;  %v2018_v5 = vld [vmem:[#allocation13 + $0x78] ss:$12 sps:$4 sm:$0xff]   ;;  %v2024_v10 = vld [vmem:[#allocation13 + $0x94] ss:$12 sps:$4 sm:$0xff]   ;;  %v2031_v11 = vld [vmem:[#allocation13 + $0x50] ss:$12 sps:$4 sm:$0xff]  }
 0x1ad   : > { %974 = vmatpush1.bf16.msra.mxu0 %v1983_v28  ;;  %v2022_v12 = vld [vmem:[#allocation13 + $0x90] ss:$12 sps:$4 sm:$0xff]   ;;  %v2028_v13 = vld [vmem:[#allocation13 + $0xac] ss:$12 sps:$4 sm:$0xff]   ;;  %v2032_v14 = vld [vmem:[#allocation13 + $0x68] ss:$12 sps:$4 sm:$0xff]  }
 0x1ae   : > { %975 = vmatprep.subr.bf16.mxu0 %v1984_v29  ;;  %v2026_v15 = vld [vmem:[#allocation13 + $0xa8] ss:$12 sps:$4 sm:$0xff]   ;;  %v2033_v18 = vld [vmem:[#allocation13 + $0x80] ss:$12 sps:$4 sm:$0xff]   ;;  %v2034_v20 = vld [vmem:[#allocation13 + $0x98] ss:$12 sps:$4 sm:$0xff]  }
 0x1af   : > { %1778 = vmatpush3.bf16.msra.mxu1 %v2005_v7  ;;  %v2035_v21 = vld [vmem:[#allocation13 + $0xb0] ss:$12 sps:$4 sm:$0xff]   ;;  %s801_s23 = scalar_lea.vmem [#allocation2], %s1733_s20  ;;  %s1734_s7 = smul.u32 48, %s2576_s17 }
 0x1b0   : > { %1779 = vmatprep.subr.bf16.mxu1 %v2271_v16  ;;  %v802_v22 = vld [vmem:[%s801_s23] sm:$0xff]  ;;  %v803_v25 = vld [vmem:[%s801_s23 + $0x8] sm:$0xff]  ;;  %s796_s1 = sadd.s32 1, %s2254_s1  }
 0x1b1   : > { %976 = vmatpush1.bf16.msra.mxu0 %v1986_v31  ;;  %s2621_s5 = scalar_lea.vmem [#allocation2], %s1734_s7  ;;  %p795_p10 = scmp.ge.s32.totalorder %s796_s1, %s2497_s6 }
 0x1b2   : > { %977 = vmatprep.subr.bf16.mxu0 %v1987_v54 }
 0x1b3   : > { %1780 = vmatpush3.bf16.msra.mxu1 %v2009_v36 }
 0x1b4   : > { %1781 = vmatprep.subr.bf16.mxu1 %v2271_v16 }
 0x1b5   : > { %978 = vmatpush1.bf16.msra.mxu0 %v1989_v6 }
 0x1b6   : > { %979 = vmatprep.subr.bf16.mxu0 %v1990_v33 }
 0x1b7   : > { %1782 = vmatpush3.bf16.msra.mxu1 %v2013_v9 }
 0x1b8   : > { %1783 = vmatprep.subr.bf16.mxu1 %v2271_v16 }
 0x1b9   : > { %980 = vmatpush1.bf16.msra.mxu0 %v1992_v34 }
 0x1ba   : > { %981 = vmatprep.subr.bf16.mxu0 %v1994_v35 }
 0x1bb   : > { %1784 = vmatpush3.bf16.msra.mxu1 %v2017_v42 }
 0x1bc   : > { %1785 = vmatprep.subr.bf16.mxu1 %v2271_v16 }
 0x1bd   : > { %982 = vmatpush1.bf16.msra.mxu0 %v1996_v37 }
 0x1be   : > { %1248 = vmatprep.subr.bf16.mxu0 %v2000_v8 }
 0x1bf   : > { %1786 = vmatpush3.bf16.msra.mxu1 %v2021_v44  ;;  %v1084_v44 = vld [vmem:[%s2621_s5 + $0x20] sm:$0xff] }
 0x1c0   : > { %1000 = vmatmul.mubr.bf16.vlgmr.msra.gmra.mrb[0].mxu0 %v838_v39  ;;  %1791 = vmatprep.subr.bf16.mxu1 %v2271_v16 }
 0x1c1   : > { %1249 = vmatpush1.bf16.msra.mxu0 %v1998_v40  ;;  %1280 = vmatprep.mubr.bf16.mxu0 %v2272_v17  ;;  %v2603_v17 = vld [vmem:[#allocation4] sm:$0xff] }
 0x1c2   : > { %1250 = vmatprep.subr.bf16.mxu0 %v2004_v41  ;;  %1788 = vmatmul.mubr.bf16.vlgmr.msra.gmra.mrb[0].mxu1 %v838_v39  ;;  %v1119_v19 = vpack.c.bf16 %v2603_v17, %v2603_v17  ;;  %v804_v39 = vld [vmem:[%s801_s23 + $0x10] sm:$0xff]  ;;  %v1083_v41 = vld [vmem:[%s2621_s5 + $0x18] sm:$0xff] }
 0x1c3   : > { %1792 = vmatpush3.bf16.msra.mxu1 %v2025_v47  ;;  %1807 = vmatprep.mubr.msk.bf16.mxu1 %vm2273_vm0, %v2271_v16 }
 0x1c4   : > { %1793 = vmatprep.subr.bf16.mxu1 %v2271_v16 }
 0x1c5   : > { %1251 = vmatpush1.bf16.msra.mxu0 %v2002_v4 }
 0x1c6   : > { %1252 = vmatprep.subr.bf16.mxu0 %v2008_v43 }
 0x1c7   : > { %1794 = vmatpush3.bf16.msra.mxu1 %v2029_v50 }
 0x1c8   : > { %1795 = vmatprep.subr.bf16.mxu1 %v2271_v16 }
 0x1c9   : > { %1253 = vmatpush1.bf16.msra.mxu0 %v2006_v45 }
 0x1ca   : > { %1254 = vmatprep.subr.bf16.mxu0 %v2012_v46 }
 0x1cb   : > { %1796 = vmatpush3.bf16.msra.mxu1 %v2030_v53 }
 0x1cc   : > { %1797 = vmatprep.subr.bf16.mxu1 %v2271_v16 }
 0x1cd   : > { %1255 = vmatpush1.bf16.msra.mxu0 %v2010_v48 }
 0x1ce   : > { %1256 = vmatprep.subr.bf16.mxu0 %v2016_v49 }
 0x1cf   : > { %1798 = vmatpush3.bf16.msra.mxu1 %v2031_v11 }
 0x1d0   : > { %1799 = vmatprep.subr.bf16.mxu1 %v2271_v16 }
 0x1d1   : > { %1257 = vmatpush1.bf16.msra.mxu0 %v2014_v51 }
 0x1d2   : > { %1258 = vmatprep.subr.bf16.mxu0 %v2020_v52 }
 0x1d3   : > { %1800 = vmatpush3.bf16.msra.mxu1 %v2032_v14 }
 0x1d4   : > { %1801 = vmatprep.subr.bf16.mxu1 %v2271_v16 }
 0x1d5   : > { %1259 = vmatpush1.bf16.msra.mxu0 %v2018_v5 }
 0x1d6   : > { %1260 = vmatprep.subr.bf16.mxu0 %v2024_v10 }
 0x1d7   : > { %1802 = vmatpush3.bf16.msra.mxu1 %v2033_v18 }
 0x1d8   : > { %1803 = vmatprep.subr.bf16.mxu1 %v2271_v16 }
 0x1d9   : > { %1261 = vmatpush1.bf16.msra.mxu0 %v2022_v12 }
 0x1da   : > { %1262 = vmatprep.subr.bf16.mxu0 %v2028_v13 }
 0x1db   : > { %1804 = vmatpush3.bf16.msra.mxu1 %v2034_v20 }
 0x1dc   : > { %1805 = vmatprep.subr.bf16.mxu1 %v2271_v16 }
 0x1dd   : > { %1263 = vmatpush1.bf16.msra.mxu0 %v2026_v15 }
 0x1df   : > { %1806 = vmatpush3.bf16.msra.mxu1 %v2035_v21 }
 0x1e0   : > { %1281 = vmatmul.mubr.bf16.vlgmr.msra.gmra.mrb[4].mxu0 %v1119_v19 }
 0x1e2   : > { %1808 = vmatmul.mubr.bf16.vlgmr.msra.gmra.mrb[4].mxu1 %v1119_v19 }
 0x221   : > { %v1074_v12 = vpop.permute.xlu0 %1073 }
 0x222   : > { %vm1075_vm3 = vcmp.eq.s32.totalorder %v1074_v12, 1 }
 0x293   : > { %v1001_v23 = vpop.f32.mrb[0].mxu0 }
 0x294   : > { %v1002_v24 = vadd.f32 %v1001_v23, %v764_v60  ;;  %v1003_v26 = vpop.f32.mrb[1].mxu0 }
 0x295   : > { %v1004_v27 = vadd.f32 %v1003_v26, %v768_v0  ;;  %v1005_v28 = vpop.f32.mrb[2].mxu0  ;;  %v1042_v54 = vpop.f32.mrb[0].mxu1 }
 0x296   : > { %v1048_v29 = vadd.f32 %v1002_v24, %v802_v22  ;;  %v1006_v16 = vpop.f32.mrb[3].mxu0  ;;  %v1789_v6 = vpop.f32.mrb[1].mxu1  ;;  %v1043_v8 = vadd.f32 %v1042_v54, %v772_v62  ;;  %v1085_v28 = vld [vmem:[%s2621_s5 + $0x28] sm:$0xff] }
 0x297   : > { %v1055_v30 = vadd.f32 %v1004_v27, %v803_v25  ;;  %v1045_v33 = vpop.f32.mrb[2].mxu1  ;;  %v1355_v6 = vpop.permute.xlu0 %1354 }
 0x298   : > { %v1686_v31 = vmul.f32 -1.442695, %v1048_v29  ;;  %v1790_v7 = vpop.f32.mrb[3].mxu1  ;;  %vm1356_vm4 = vcmp.eq.s32.totalorder %v1355_v6, 1 }
 0x299   : > { %v1687_v32 = vmul.f32 -1.442695, %v1055_v30 }
 0x29a   : > { %2036 = vpow2.f32 %v1686_v31 }
 0x29b   : > { %2038 = vpow2.f32 %v1687_v32 }
 0x2a4   : > { %v2037_v34 = vpop.eup %2036 }
 0x2a5   : > { %v1052_v35 = vadd.f32 1.0, %v2037_v34  ;;  %v2039_v36 = vpop.eup %2038 }
 0x2a6   : > { %v1059_v37 = vadd.f32 1.0, %v2039_v36 }
 0x2a7   : > { %2040 = vrcp.f32 %v1052_v35 }
 0x2a8   : > { %2042 = vrcp.f32 %v1059_v37 }
 0x2b1   : > { %v2041_v9 = vpop.eup %2040 }
 0x2b2   : > { %v1062_v40 = vmul.f32 %v2041_v9, %v1043_v8  ;;  %v2043_v52 = vpop.eup %2042 }
 0x2b3   : > { %v1282_v42 = vpop.f32.mrb[4].mxu0  ;;  %v1065_v13 = vsub.f32 1.0, %v2043_v52  ;;  %v1067_v19 = vmul.f32 %v2043_v52, %v2588_v38 }
 0x2b4   : > { %v1063_v4 = vadd.f32 %v1062_v40, %v804_v39  ;;  %v1283_v43 = vadd.f32 %v1282_v42, %v781_v61  ;;  %v1284_v45 = vpop.f32.mrb[5].mxu0 }
 0x2b5   : > { %v1285_v46 = vadd.f32 %v1284_v45, %v785_v1  ;;  %v1286_v47 = vpop.f32.mrb[6].mxu0  ;;  %v1323_v53 = vpop.f32.mrb[4].mxu1 }
 0x2b6   : > { %2044 = vtanh.f32 %v1063_v4  ;;  %v1329_v48 = vadd.f32 %v1283_v43, %v1083_v41  ;;  %v1287_v49 = vpop.f32.mrb[7].mxu0  ;;  %v1809_v10 = vpop.f32.mrb[5].mxu1  ;;  %v1324_v26 = vadd.f32 %v1323_v53, %v789_v63 }
 0x2b7   : > { %v1336_v50 = vadd.f32 %v1285_v46, %v1084_v44  ;;  %v1326_v11 = vpop.f32.mrb[6].mxu1 }
 0x2b8   : > { %v1714_v51 = vmul.f32 -1.442695, %v1329_v48  ;;  %v1810_v14 = vpop.f32.mrb[7].mxu1 }
 0x2b9   : > { %v1715_v5 = vmul.f32 -1.442695, %v1336_v50 }
 0x2ba   : > { %2046 = vpow2.f32 %v1714_v51 }
 0x2bb   : > { %2048 = vpow2.f32 %v1715_v5 }
 0x2c0   : > { %v2045_v15 = vpop.eup %2044 }
 0x2c1   : > { %v1066_v18 = vmul.f32 %v2045_v15, %v1065_v13 }
 0x2c3   : > { %v1068_v20 = vadd.f32 %v1067_v19, %v1066_v18 }
 0x2c4   : > { %v2047_v21 = vpop.eup %2046 }
 0x2c5   : > { %v1333_v22 = vadd.f32 1.0, %v2047_v21  ;;  %v1076_v23 = vsel %vm1075_vm3, %v1068_v20, %v2588_v38  ;;  %v2049_v24 = vpop.eup %2048 }
 0x2c6   : > { %1077 = vst [vmem:[#allocation3] sm:$0xff] %v1076_v23  ;;  %v1340_v25 = vadd.f32 1.0, %v2049_v24 }
 0x2c7   : > { %2050 = vrcp.f32 %v1333_v22 }
 0x2c8   : > { %2052 = vrcp.f32 %v1340_v25 }
 0x2d1   : > { %v2051_v27 = vpop.eup %2050 }
 0x2d2   : > { %v1343_v29 = vmul.f32 %v2051_v27, %v1324_v26  ;;  %v2053_v30 = vpop.eup %2052 }
 0x2d3   : > { %v1346_v31 = vsub.f32 1.0, %v2053_v30  ;;  %v1348_v38 = vmul.f32 %v2053_v30, %v2603_v17 }
 0x2d4   : > { %v1344_v16 = vadd.f32 %v1343_v29, %v1085_v28 }
 0x2d6   : > { %2054 = vtanh.f32 %v1344_v16 }
 0x2e0   : > { %v2055_v54 = vpop.eup %2054  ;;  %798 = sbr.rel (!%p795_p10) target bundleno = 414 (0x19e), region = 105 }
 0x2e1   : > { %v1347_v32 = vmul.f32 %v2055_v54, %v1346_v31 }
 0x2e3   : > { %v1349_v33 = vadd.f32 %v1348_v38, %v1347_v32 }
 0x2e5   : > { %v1357_v7 = vsel %vm1356_vm4, %v1349_v33, %v2603_v17 }
 0x2e6   : > { %1358 = vst [vmem:[#allocation4] sm:$0xff] %v1357_v7 }
 0x2e7 PF:  { %1811 = vmatprep.subr.bf16.mxu0 %v2270_v3  ;;  %1831 = vmatprep.subr.bf16.mxu1 %v2270_v3  ;;  %v2056_v34 = vld [vmem:[#allocation15] sm:$0xff]   ;;  %vm2274_vm5 = vmmov 0   ;;  %v2058_v17 = vld [vmem:[#allocation15 + $0x8] sm:$0xff]   ;;  %v2060_v55 = vld [vmem:[#allocation15 + $0x10] sm:$0xff]   ;;  %s2275_s19 = smov [#allocation18]  }
 0x2e8   :  { %v2057_v35 = vld [vmem:[#allocation16] sm:$0xff]   ;;  %1827 = vmatprep.mubr.msk.bf16.mxu0 %vm2274_vm5, %v2270_v3  ;;  %1847 = vmatprep.mubr.msk.bf16.mxu1 %vm2274_vm5, %v2270_v3  ;;  %v2059_v36 = vld [vmem:[#allocation16 + $0x8] sm:$0xff]   ;;  %v2061_v56 = vld [vmem:[#allocation16 + $0x10] sm:$0xff]   ;;  %s1586_s24 = sshll.u32 %s2275_s19, 4  ;;  %s1587_s24 = int_to_ptr.vmem [resolvable:$true] %s1586_s24 }
 0x2e9   :  { %1812 = vmatpush3.bf16.msra.mxu0 %v2056_v34  ;;  %1832 = vmatpush3.bf16.msra.mxu1 %v2057_v35  ;;  %v2062_v57 = vld [vmem:[#allocation15 + $0x18] sm:$0xff]   ;;  %v2064_v59 = vld [vmem:[#allocation15 + $0x20] sm:$0xff]   ;;  %v2066_v61 = vld [vmem:[#allocation15 + $0x28] sm:$0xff]   ;;  %s2214_s25 = scalar_lea.vmem %s1587_s24, 128  ;;  %p2219_p12 = scmp.lt.s32.totalorder %s1587_s24, %s1587_s24 }
 0x2ea   :  { %1813 = vmatprep.subr.bf16.mxu0 %v2270_v3  ;;  %1833 = vmatprep.subr.bf16.mxu1 %v2270_v3  ;;  %v2063_v58 = vld [vmem:[#allocation16 + $0x18] sm:$0xff]   ;;  %v2065_v60 = vld [vmem:[#allocation16 + $0x20] sm:$0xff]   ;;  %v2067_v62 = vld [vmem:[#allocation16 + $0x28] sm:$0xff]   ;;  %p2215_p11 = scmp.ne.s32.totalorder %s1587_s24, %s2214_s25  ;;  %p2220_p13 = scmp.lt.s32.totalorder %s2214_s25, %s2214_s25 }
 0x2eb   :  { %v2068_v63 = vld [vmem:[#allocation15 + $0x30] sm:$0xff]   ;;  %v2070_v1 = vld [vmem:[#allocation15 + $0x38] sm:$0xff]  }
 0x2ec   :  { %v2069_v0 = vld [vmem:[#allocation16 + $0x30] sm:$0xff]   ;;  %v2071_v37 = vld [vmem:[#allocation16 + $0x38] sm:$0xff]   ;;  %p2221_p0 = por %p2220_p13, %p2219_p12 }
 0x2ed   :  { %1814 = vmatpush3.bf16.msra.mxu0 %v2058_v17  ;;  %1834 = vmatpush3.bf16.msra.mxu1 %v2059_v36  ;;  %v1393_v2 = vld [vmem:[#allocation3] sm:$0xff]  ;;  %v1391_v8 = vld [vmem:[#allocation4] sm:$0xff] }
 0x2ee   :  { %1815 = vmatprep.subr.bf16.mxu0 %v2270_v3  ;;  %1835 = vmatprep.subr.bf16.mxu1 %v2270_v3  ;;  %v1394_v9 = vpack.c.bf16 %v1393_v2, %v1393_v2  ;;  %v1392_v39 = vpack.c.bf16 %v1391_v8, %v1391_v8  ;;  %v1732_v4 = vld [vmem:[%s2687_s11] ss:$0 sm:$0xff]  ;;  %p2222_p1 = pnand %p2221_p0, %p2215_p11 }
 0x2f1   :  { %1816 = vmatpush3.bf16.msra.mxu0 %v2060_v55  ;;  %1836 = vmatpush3.bf16.msra.mxu1 %v2061_v56 }
 0x2f2   :  { %1817 = vmatprep.subr.bf16.mxu0 %v2270_v3  ;;  %1837 = vmatprep.subr.bf16.mxu1 %v2270_v3 }
 0x2f5   :  { %1818 = vmatpush3.bf16.msra.mxu0 %v2062_v57  ;;  %1838 = vmatpush3.bf16.msra.mxu1 %v2063_v58 }
 0x2f6   :  { %1819 = vmatprep.subr.bf16.mxu0 %v2270_v3  ;;  %1839 = vmatprep.subr.bf16.mxu1 %v2270_v3 }
 0x2f9   :  { %1820 = vmatpush3.bf16.msra.mxu0 %v2064_v59  ;;  %1840 = vmatpush3.bf16.msra.mxu1 %v2065_v60 }
 0x2fa   :  { %1821 = vmatprep.subr.bf16.mxu0 %v2270_v3  ;;  %1841 = vmatprep.subr.bf16.mxu1 %v2270_v3 }
 0x2fd   :  { %1822 = vmatpush3.bf16.msra.mxu0 %v2066_v61  ;;  %1842 = vmatpush3.bf16.msra.mxu1 %v2067_v62 }
 0x2fe   :  { %1823 = vmatprep.subr.bf16.mxu0 %v2270_v3  ;;  %1843 = vmatprep.subr.bf16.mxu1 %v2270_v3 }
 0x301   :  { %1824 = vmatpush3.bf16.msra.mxu0 %v2068_v63  ;;  %1844 = vmatpush3.bf16.msra.mxu1 %v2069_v0 }
 0x302   :  { %1825 = vmatprep.subr.bf16.mxu0 %v2270_v3  ;;  %1845 = vmatprep.subr.bf16.mxu1 %v2270_v3 }
 0x305   :  { %1826 = vmatpush3.bf16.msra.mxu0 %v2070_v1  ;;  %1846 = vmatpush3.bf16.msra.mxu1 %v2071_v37 }
 0x308   :  { %1828 = vmatmul.mubr.bf16.vlgmr.msra.gmra.mrb[0].mxu0 %v1394_v9  ;;  %1848 = vmatmul.mubr.bf16.vlgmr.msra.gmra.mrb[0].mxu1 %v1392_v39 }
 0x3db   :  { %v1477_v40 = vpop.f32.mrb[0].mxu0  ;;  %v1565_v41 = vpop.f32.mrb[0].mxu1 }
 0x3dc   :  { %v1829_v42 = vpop.f32.mrb[1].mxu0  ;;  %v1566_v43 = vadd.f32 %v1565_v41, %v1477_v40  ;;  %v1849_v44 = vpop.f32.mrb[1].mxu1 }
 0x3dd   :  { %v1480_v45 = vpop.f32.mrb[2].mxu0  ;;  %v1568_v46 = vpop.f32.mrb[2].mxu1 }
 0x3de   :  { %v1830_v3 = vpop.f32.mrb[3].mxu0  ;;  %v1850_v47 = vpop.f32.mrb[3].mxu1  ;;  %v1578_v48 = vadd.f32 %v1732_v4, %v1566_v43 }
 0x3e0   :  { %1579 = vst [vmem:[#allocation18] sm:$0xff] %v1578_v48 }
 0x3e1   :  { %2225 = shalt.err (!%p2222_p1)
}
 0x3e2   :  { %s2226_s27 = scalar_lea.hbm %s2688_s12, 128 }
 0x3e3   :  { %p2227_p2 = scmp.ne.s32.totalorder %s2688_s12, %s2226_s27  ;;  %p2230_p3 = scmp.lt.u32.totalorder %s2226_s27, %s2688_s12 }
 0x3e5   :  { %p2232_p4 = pnand %p2230_p3, %p2227_p2 }
 0x3e7   :  { %2235 = shalt.err (!%p2232_p4)
}
 0x3e8   :  { %1589 = dma.vmem_to_hbm [thread:$0]  %s1587_s24, 128, %s2688_s12, [#allocation7]  }
 0x3e9   :  { %2250 = dma.done.wait [#allocation7], 128  }
 0x3ea   :  { %2251 = vsyncadd [#allocation7], 4294967168 }
 0x3eb   :  { %1593 = vsyncpa [#allocation6], 1 }
 0x3ec   :  { %1594 = vsyncpa [#allocation11], 1 }
 0x3ed   :  { %1595 = vsyncpa [#allocation14], 1 }
 0x3ee   :  { %1596 = vsyncpa [#allocation17], 1 }
 0x3ef   :  { %1597 = vsyncpa [#allocation7], 1 }
 0x3f0   :  { %1598 = vsyncpa [#allocation8], 1 }

</bundles_post_ra>
